<compile_context>
chip_gen: v7x
topology: tpu7x:2x2x1
jax: 0.10.0
libtpu: 0.0.40
codegen_flags: <defaults>
</compile_context>

<pallas_src>
import math

import jax
import jax.numpy as jnp
import numpy as np
from jax.experimental import pallas as pl
from jax.experimental.pallas import tpu as pltpu

HIDDEN = 128  # coupling MLP hidden width (lane friendly)


def _round_up(x, m):
    return ((x + m - 1) // m) * m


# ---------------------------------------------------------------------------
# Shared math (used by both the Pallas kernel body and the JAX reference).
# Inputs may be Refs or jnp arrays (both support `[...]`).
# ---------------------------------------------------------------------------
def _coupling_half_inverse(xa, xb, w1_ref, b1_ref, w2_ref, b2_ref):
    """Inverse of one affine coupling layer on pre-split halves.

    xa: conditioning half (unchanged), (B, dh)
    xb: transformed half,              (B, dh)
    Returns (xb_new, s); log-det contribution of this layer is -sum(s, axis=-1).
    Matmul operands are cast to bf16 (MXU), accumulation and all other math f32.
    """
    dh = xb.shape[-1]
    h = jnp.dot(
        xa.astype(jnp.bfloat16),
        w1_ref[...].astype(jnp.bfloat16),
        preferred_element_type=jnp.float32,
    ) + b1_ref[...]
    h = jnp.maximum(h, 0.0)
    st = jnp.dot(
        h.astype(jnp.bfloat16),
        w2_ref[...].astype(jnp.bfloat16),
        preferred_element_type=jnp.float32,
    ) + b2_ref[...]
    s = jnp.tanh(st[:, :dh])
    t = st[:, dh:]
    xb_new = (xb - t) * jnp.exp(-s)
    return xb_new, s


# ---------------------------------------------------------------------------
# Pallas kernel: one batch tile of the full inverse pass + base log-probs.
# ---------------------------------------------------------------------------
def _nll_kernel(
    x_ref,
    w1_a_ref, b1_a_ref, w2_a_ref, b2_a_ref,   # level-1 flow[1] (swap=True), applied first
    w1_b_ref, b1_b_ref, w2_b_ref, b2_b_ref,   # level-1 flow[0] (swap=False)
    loc1_ref, invs1_ref,                      # q0[1]: loc, exp(-log_scale)
    w1_c_ref, b1_c_ref, w2_c_ref, b2_c_ref,   # level-0 flow[1] (swap=True)
    w1_d_ref, b1_d_ref, w2_d_ref, b2_d_ref,   # level-0 flow[0] (swap=False)
    loc0_ref, invs0_ref,                      # q0[0]: loc, exp(-log_scale)
    const_ref,                                # (1,1): sum of Gaussian normalizers
    out_ref,
):
    D = x_ref.shape[-1]
    dh = D // 2
    dq = D // 4

    # Carry halves separately: no concat / re-split between couplings.
    h1 = x_ref[:, :dh]
    h2 = x_ref[:, dh:]

    # ---- level 1 (full width D), flows applied in reverse order ----
    # swap=True:  xa = second half, transformed half = first half
    h1, s_a = _coupling_half_inverse(h2, h1, w1_a_ref, b1_a_ref, w2_a_ref, b2_a_ref)
    # swap=False: xa = first half,  transformed half = second half
    h2, s_b = _coupling_half_inverse(h1, h2, w1_b_ref, b1_b_ref, w2_b_ref, b2_b_ref)

    # merges[0].inverse(): split (log_det = 0); second half -> q0[1].log_prob
    d1 = (h2 - loc1_ref[...]) * invs1_ref[...]
    acc_wide = s_a + s_b + 0.5 * (d1 * d1)            # (TM, dh)

    # ---- level 0 (width D/2), on the remaining half ----
    g1 = h1[:, :dq]
    g2 = h1[:, dq:]
    g1, s_c = _coupling_half_inverse(g2, g1, w1_c_ref, b1_c_ref, w2_c_ref, b2_c_ref)
    g2, s_d = _coupling_half_inverse(g1, g2, w1_d_ref, b1_d_ref, w2_d_ref, b2_d_ref)

    d0a = (g1 - loc0_ref[:, :dq]) * invs0_ref[:, :dq]
    d0b = (g2 - loc0_ref[:, dq:]) * invs0_ref[:, dq:]
    acc_narrow = s_c + s_d + 0.5 * (d0a * d0a + d0b * d0b)   # (TM, dq)

    # NLL = -log_q = sum(all log-scale terms + 0.5*quadratic terms) - const
    out_ref[...] = (
        jnp.sum(acc_wide, axis=-1, keepdims=True)
        + jnp.sum(acc_narrow, axis=-1, keepdims=True)
        - const_ref[0, 0]
    )


# ---------------------------------------------------------------------------
# Wrapper
# ---------------------------------------------------------------------------
def multiscale_flow_forward(x_nchw, params, *, block_m=256):
    """forward(x) = -log_prob(x).  Returns (B,) negative log-likelihoods."""
    B = x_nchw.shape[0]
    D = int(np.prod(x_nchw.shape[1:]))
    x = x_nchw.reshape(B, D).astype(jnp.float32)

    assert block_m % 8 == 0, "block_m must be a multiple of 8 (f32 sublane)"
    tm = min(block_m, _round_up(B, 8))
    B_pad = _round_up(B, tm)
    if B_pad != B:
        x = jnp.pad(x, ((0, B_pad - B), (0, 0)))   # tail rows are discarded below
    num_tiles = B_pad // tm

    dh = D // 2
    ls1 = params["logscale1"].astype(jnp.float32)
    ls0 = params["logscale0"].astype(jnp.float32)
    # Batch-independent Gaussian pieces, precomputed once (no per-tile exp/reduce).
    const = (-float(dh) * math.log(2.0 * math.pi)
             - jnp.sum(ls1) - jnp.sum(ls0)).reshape(1, 1).astype(jnp.float32)
    invs1 = jnp.exp(-ls1).reshape(1, -1)
    invs0 = jnp.exp(-ls0).reshape(1, -1)

    def pack_flow(p):
        w1, b1, w2, b2 = p
        return [
            w1.astype(jnp.bfloat16),
            b1.reshape(1, -1).astype(jnp.float32),
            w2.astype(jnp.bfloat16),
            b2.reshape(1, -1).astype(jnp.float32),
        ]

    fl = params["flows"]
    inputs = [x]
    inputs += pack_flow(fl[1])                      # level-1 flow 1 (first in inverse)
    inputs += pack_flow(fl[0])                      # level-1 flow 0
    inputs += [params["loc1"].reshape(1, -1).astype(jnp.float32), invs1]
    inputs += pack_flow(fl[3])                      # level-0 flow 1
    inputs += pack_flow(fl[2])                      # level-0 flow 0
    inputs += [params["loc0"].reshape(1, -1).astype(jnp.float32), invs0]
    inputs += [const]

    # x / out revolve with the grid; everything else is resident (constant index_map).
    in_specs = [pl.BlockSpec((tm, D), lambda i: (i, 0))]
    in_specs += [pl.BlockSpec(a.shape, lambda i: (0, 0)) for a in inputs[1:]]

    out = pl.pallas_call(
        _nll_kernel,
        out_shape=jax.ShapeDtypeStruct((B_pad, 1), jnp.float32),
        grid=(num_tiles,),
        in_specs=in_specs,
        out_specs=pl.BlockSpec((tm, 1), lambda i: (i, 0)),
        compiler_params=pltpu.CompilerParams(
            dimension_semantics=("parallel",),
            vmem_limit_bytes=48 * 1024 * 1024,
        ),
    )(*inputs)
    return out[:B, 0]


# ---------------------------------------------------------------------------
# Pure-JAX reference of the same forward pass (for correctness check).
# ---------------------------------------------------------------------------
def reference_forward(x_nchw, params):
    B = x_nchw.shape[0]
    D = int(np.prod(x_nchw.shape[1:]))
    z = x_nchw.reshape(B, D).astype(jnp.float32)
    dh, dq = D // 2, D // 4

    fl = [
        (w1, b1.reshape(1, -1), w2, b2.reshape(1, -1))
        for (w1, b1, w2, b2) in params["flows"]
    ]
    loc1 = params["loc1"].reshape(1, -1)
    loc0 = params["loc0"].reshape(1, -1)
    ls1 = params["logscale1"].astype(jnp.float32)
    ls0 = params["logscale0"].astype(jnp.float32)

    h1, h2 = z[:, :dh], z[:, dh:]
    h1, s_a = _coupling_half_inverse(h2, h1, *fl[1])     # level 1, inverse order
    h2, s_b = _coupling_half_inverse(h1, h2, *fl[0])
    d1 = (h2 - loc1) * jnp.exp(-ls1).reshape(1, -1)      # q0[1].log_prob pieces

    g1, g2 = h1[:, :dq], h1[:, dq:]
    g1, s_c = _coupling_half_inverse(g2, g1, *fl[3])     # level 0
    g2, s_d = _coupling_half_inverse(g1, g2, *fl[2])
    invs0 = jnp.exp(-ls0).reshape(1, -1)
    d0a = (g1 - loc0[:, :dq]) * invs0[:, :dq]
    d0b = (g2 - loc0[:, dq:]) * invs0[:, dq:]

    const = -float(dh) * math.log(2.0 * math.pi) - jnp.sum(ls1) - jnp.sum(ls0)
    nll = (
        jnp.sum(s_a + s_b + 0.5 * d1 * d1, axis=-1)
        + jnp.sum(s_c + s_d + 0.5 * (d0a * d0a + d0b * d0b), axis=-1)
        - const
    )
    return nll


def init_params(key, D, hidden=HIDDEN):
    """Deterministic synthetic parameter init (no checkpoint loading)."""

    def mlp(k, din, dh_out):
        k1, k2 = jax.random.split(k)
        w1 = jax.random.normal(k1, (din, hidden), jnp.float32) / jnp.sqrt(
            jnp.float32(din)
        )
        b1 = jnp.zeros((hidden,), jnp.float32)
        w2 = jax.random.normal(k2, (hidden, 2 * dh_out), jnp.float32) * 0.05
        b2 = jnp.zeros((2 * dh_out,), jnp.float32)
        return (w1, b1, w2, b2)

    keys = jax.random.split(key, 8)
    flows = [
        mlp(keys[0], D // 2, D // 2),  # level 1, flow 0 (operates on D)
        mlp(keys[1], D // 2, D // 2),  # level 1, flow 1
        mlp(keys[2], D // 4, D // 4),  # level 0, flow 0 (operates on D/2)
        mlp(keys[3], D // 4, D // 4),  # level 0, flow 1
    ]
    return dict(
        flows=flows,
        loc1=jax.random.normal(keys[4], (D // 2,), jnp.float32) * 0.1,
        logscale1=jax.random.normal(keys[5], (D // 2,), jnp.float32) * 0.05,
        loc0=jax.random.normal(keys[6], (D // 2,), jnp.float32) * 0.1,
        logscale0=jax.random.normal(keys[7], (D // 2,), jnp.float32) * 0.05,
    )


# TODO(synk): class-conditional base distributions (y), intervention_targets /
# distr_idx branches, and the optional `transform` are not instantiated
# (class_cond=False, transform=None in this synthetic configuration).

if __name__ == "__main__":
    key = jax.random.PRNGKey(0)
    kx, kp = jax.random.split(key)

    # x: NCHW, D = C*H*W = 1024.  B=24 with block_m=16 exercises a multi-step
    # batch grid (2 tiles) plus tail padding while staying small.
    B, C, H, W = 24, 4, 16, 16
    x = jax.random.normal(kx, (B, C, H, W), jnp.float32)
    params = init_params(kp, C * H * W)

    nll = multiscale_flow_forward(x, params, block_m=16)
    nll = jax.block_until_ready(nll)

    ref = jax.block_until_ready(reference_forward(x, params))
    np.testing.assert_allclose(np.asarray(nll), np.asarray(ref), rtol=2e-3, atol=5e-2)

    print("KERNEL_OK")
</pallas_src>

<mosaic_0001>
module attributes {stable_mosaic.version = 11 : i64} {
  func.func @_nll_kernel(%arg0: i32, %arg1: memref<16x1024xf32, #tpu.memory_space<vmem>>, %arg2: memref<512x128xbf16, #tpu.memory_space<vmem>>, %arg3: memref<1x128xf32, #tpu.memory_space<vmem>>, %arg4: memref<128x1024xbf16, #tpu.memory_space<vmem>>, %arg5: memref<1x1024xf32, #tpu.memory_space<vmem>>, %arg6: memref<512x128xbf16, #tpu.memory_space<vmem>>, %arg7: memref<1x128xf32, #tpu.memory_space<vmem>>, %arg8: memref<128x1024xbf16, #tpu.memory_space<vmem>>, %arg9: memref<1x1024xf32, #tpu.memory_space<vmem>>, %arg10: memref<1x512xf32, #tpu.memory_space<vmem>>, %arg11: memref<1x512xf32, #tpu.memory_space<vmem>>, %arg12: memref<256x128xbf16, #tpu.memory_space<vmem>>, %arg13: memref<1x128xf32, #tpu.memory_space<vmem>>, %arg14: memref<128x512xbf16, #tpu.memory_space<vmem>>, %arg15: memref<1x512xf32, #tpu.memory_space<vmem>>, %arg16: memref<256x128xbf16, #tpu.memory_space<vmem>>, %arg17: memref<1x128xf32, #tpu.memory_space<vmem>>, %arg18: memref<128x512xbf16, #tpu.memory_space<vmem>>, %arg19: memref<1x512xf32, #tpu.memory_space<vmem>>, %arg20: memref<1x512xf32, #tpu.memory_space<vmem>>, %arg21: memref<1x512xf32, #tpu.memory_space<vmem>>, %arg22: memref<1x1xf32, #tpu.memory_space<vmem>>, %arg23: memref<16x1xf32, #tpu.memory_space<vmem>>) attributes {dimension_semantics = [#tpu.dimension_semantics<parallel>], iteration_bounds = array<i64: 2>, scalar_prefetch = 0 : i64, scratch_operands = 0 : i64, tpu.core_type = #tpu.core_type<tc>, window_params = [{transform_indices = @transform_0, window_bounds = array<i64: 16, 1024>}, {pipeline_mode = #tpu.pipeline_mode<synchronous>, transform_indices = @transform_1, window_bounds = array<i64: 512, 128>}, {pipeline_mode = #tpu.pipeline_mode<synchronous>, transform_indices = @transform_2, window_bounds = array<i64: 1, 128>}, {pipeline_mode = #tpu.pipeline_mode<synchronous>, transform_indices = @transform_3, window_bounds = array<i64: 128, 1024>}, {pipeline_mode = #tpu.pipeline_mode<synchronous>, transform_indices = @transform_4, window_bounds = array<i64: 1, 1024>}, {pipeline_mode = #tpu.pipeline_mode<synchronous>, transform_indices = @transform_5, window_bounds = array<i64: 512, 128>}, {pipeline_mode = #tpu.pipeline_mode<synchronous>, transform_indices = @transform_6, window_bounds = array<i64: 1, 128>}, {pipeline_mode = #tpu.pipeline_mode<synchronous>, transform_indices = @transform_7, window_bounds = array<i64: 128, 1024>}, {pipeline_mode = #tpu.pipeline_mode<synchronous>, transform_indices = @transform_8, window_bounds = array<i64: 1, 1024>}, {pipeline_mode = #tpu.pipeline_mode<synchronous>, transform_indices = @transform_9, window_bounds = array<i64: 1, 512>}, {pipeline_mode = #tpu.pipeline_mode<synchronous>, transform_indices = @transform_10, window_bounds = array<i64: 1, 512>}, {pipeline_mode = #tpu.pipeline_mode<synchronous>, transform_indices = @transform_11, window_bounds = array<i64: 256, 128>}, {pipeline_mode = #tpu.pipeline_mode<synchronous>, transform_indices = @transform_12, window_bounds = array<i64: 1, 128>}, {pipeline_mode = #tpu.pipeline_mode<synchronous>, transform_indices = @transform_13, window_bounds = array<i64: 128, 512>}, {pipeline_mode = #tpu.pipeline_mode<synchronous>, transform_indices = @transform_14, window_bounds = array<i64: 1, 512>}, {pipeline_mode = #tpu.pipeline_mode<synchronous>, transform_indices = @transform_15, window_bounds = array<i64: 256, 128>}, {pipeline_mode = #tpu.pipeline_mode<synchronous>, transform_indices = @transform_16, window_bounds = array<i64: 1, 128>}, {pipeline_mode = #tpu.pipeline_mode<synchronous>, transform_indices = @transform_17, window_bounds = array<i64: 128, 512>}, {pipeline_mode = #tpu.pipeline_mode<synchronous>, transform_indices = @transform_18, window_bounds = array<i64: 1, 512>}, {pipeline_mode = #tpu.pipeline_mode<synchronous>, transform_indices = @transform_19, window_bounds = array<i64: 1, 512>}, {pipeline_mode = #tpu.pipeline_mode<synchronous>, transform_indices = @transform_20, window_bounds = array<i64: 1, 512>}, {pipeline_mode = #tpu.pipeline_mode<synchronous>, transform_indices = @transform_21, window_bounds = array<i64: 1, 1>}, {transform_indices = @transform_22, window_bounds = array<i64: 16, 1>}]} {
    %c0 = arith.constant 0 : index
    %c0_0 = arith.constant 0 : index
    %0 = vector.load %arg1[%c0, %c0_0] : memref<16x1024xf32, #tpu.memory_space<vmem>>, vector<16x512xf32>
    %c0_1 = arith.constant 0 : index
    %c512 = arith.constant 512 : index
    %1 = vector.load %arg1[%c0_1, %c512] : memref<16x1024xf32, #tpu.memory_space<vmem>>, vector<16x512xf32>
    %2 = arith.truncf %1 : vector<16x512xf32> to vector<16x512xbf16>
    %c0_2 = arith.constant 0 : index
    %c0_3 = arith.constant 0 : index
    %3 = vector.load %arg2[%c0_2, %c0_3] : memref<512x128xbf16, #tpu.memory_space<vmem>>, vector<512x128xbf16>
    %cst = arith.constant dense<0.000000e+00> : vector<16x128xf32>
    %4 = tpu.matmul %2, %3, %cst {dimension_numbers = #tpu.dot_dimension_numbers<[1], [0], [0], [1], [0, 0, 1, 1], [], []>} : vector<16x512xbf16>, vector<512x128xbf16>, vector<16x128xf32> -> vector<16x128xf32>
    %c0_4 = arith.constant 0 : index
    %c0_5 = arith.constant 0 : index
    %5 = vector.load %arg3[%c0_4, %c0_5] : memref<1x128xf32, #tpu.memory_space<vmem>>, vector<1x128xf32>
    %6 = vector.broadcast %5 : vector<1x128xf32> to vector<16x128xf32>
    %7 = arith.addf %4, %6 : vector<16x128xf32>
    %cst_6 = arith.constant 0.000000e+00 : f32
    %8 = vector.broadcast %cst_6 : f32 to vector<16x128xf32>
    %9 = arith.maximumf %7, %8 : vector<16x128xf32>
    %10 = arith.truncf %9 : vector<16x128xf32> to vector<16x128xbf16>
    %c0_7 = arith.constant 0 : index
    %c0_8 = arith.constant 0 : index
    %11 = vector.load %arg4[%c0_7, %c0_8] : memref<128x1024xbf16, #tpu.memory_space<vmem>>, vector<128x1024xbf16>
    %cst_9 = arith.constant dense<0.000000e+00> : vector<16x1024xf32>
    %12 = tpu.matmul %10, %11, %cst_9 {dimension_numbers = #tpu.dot_dimension_numbers<[1], [0], [0], [1], [0, 0, 1, 1], [], []>} : vector<16x128xbf16>, vector<128x1024xbf16>, vector<16x1024xf32> -> vector<16x1024xf32>
    %c0_10 = arith.constant 0 : index
    %c0_11 = arith.constant 0 : index
    %13 = vector.load %arg5[%c0_10, %c0_11] : memref<1x1024xf32, #tpu.memory_space<vmem>>, vector<1x1024xf32>
    %14 = vector.broadcast %13 : vector<1x1024xf32> to vector<16x1024xf32>
    %15 = arith.addf %12, %14 : vector<16x1024xf32>
    %16 = vector.extract_strided_slice %15 {offsets = [0, 0], sizes = [16, 512], strides = [1, 1]} : vector<16x1024xf32> to vector<16x512xf32>
    %17 = math.tanh %16 : vector<16x512xf32>
    %18 = vector.extract_strided_slice %15 {offsets = [0, 512], sizes = [16, 512], strides = [1, 1]} : vector<16x1024xf32> to vector<16x512xf32>
    %19 = arith.subf %0, %18 : vector<16x512xf32>
    %cst_12 = arith.constant 0.000000e+00 : f32
    %20 = vector.broadcast %cst_12 : f32 to vector<16x512xf32>
    %21 = arith.subf %20, %17 : vector<16x512xf32>
    %22 = math.exp %21 : vector<16x512xf32>
    %23 = arith.mulf %19, %22 : vector<16x512xf32>
    %24 = arith.truncf %23 : vector<16x512xf32> to vector<16x512xbf16>
    %c0_13 = arith.constant 0 : index
    %c0_14 = arith.constant 0 : index
    %25 = vector.load %arg6[%c0_13, %c0_14] : memref<512x128xbf16, #tpu.memory_space<vmem>>, vector<512x128xbf16>
    %cst_15 = arith.constant dense<0.000000e+00> : vector<16x128xf32>
    %26 = tpu.matmul %24, %25, %cst_15 {dimension_numbers = #tpu.dot_dimension_numbers<[1], [0], [0], [1], [0, 0, 1, 1], [], []>} : vector<16x512xbf16>, vector<512x128xbf16>, vector<16x128xf32> -> vector<16x128xf32>
    %c0_16 = arith.constant 0 : index
    %c0_17 = arith.constant 0 : index
    %27 = vector.load %arg7[%c0_16, %c0_17] : memref<1x128xf32, #tpu.memory_space<vmem>>, vector<1x128xf32>
    %28 = vector.broadcast %27 : vector<1x128xf32> to vector<16x128xf32>
    %29 = arith.addf %26, %28 : vector<16x128xf32>
    %cst_18 = arith.constant 0.000000e+00 : f32
    %30 = vector.broadcast %cst_18 : f32 to vector<16x128xf32>
    %31 = arith.maximumf %29, %30 : vector<16x128xf32>
    %32 = arith.truncf %31 : vector<16x128xf32> to vector<16x128xbf16>
    %c0_19 = arith.constant 0 : index
    %c0_20 = arith.constant 0 : index
    %33 = vector.load %arg8[%c0_19, %c0_20] : memref<128x1024xbf16, #tpu.memory_space<vmem>>, vector<128x1024xbf16>
    %cst_21 = arith.constant dense<0.000000e+00> : vector<16x1024xf32>
    %34 = tpu.matmul %32, %33, %cst_21 {dimension_numbers = #tpu.dot_dimension_numbers<[1], [0], [0], [1], [0, 0, 1, 1], [], []>} : vector<16x128xbf16>, vector<128x1024xbf16>, vector<16x1024xf32> -> vector<16x1024xf32>
    %c0_22 = arith.constant 0 : index
    %c0_23 = arith.constant 0 : index
    %35 = vector.load %arg9[%c0_22, %c0_23] : memref<1x1024xf32, #tpu.memory_space<vmem>>, vector<1x1024xf32>
    %36 = vector.broadcast %35 : vector<1x1024xf32> to vector<16x1024xf32>
    %37 = arith.addf %34, %36 : vector<16x1024xf32>
    %38 = vector.extract_strided_slice %37 {offsets = [0, 0], sizes = [16, 512], strides = [1, 1]} : vector<16x1024xf32> to vector<16x512xf32>
    %39 = math.tanh %38 : vector<16x512xf32>
    %40 = vector.extract_strided_slice %37 {offsets = [0, 512], sizes = [16, 512], strides = [1, 1]} : vector<16x1024xf32> to vector<16x512xf32>
    %41 = arith.subf %1, %40 : vector<16x512xf32>
    %cst_24 = arith.constant 0.000000e+00 : f32
    %42 = vector.broadcast %cst_24 : f32 to vector<16x512xf32>
    %43 = arith.subf %42, %39 : vector<16x512xf32>
    %44 = math.exp %43 : vector<16x512xf32>
    %45 = arith.mulf %41, %44 : vector<16x512xf32>
    %c0_25 = arith.constant 0 : index
    %c0_26 = arith.constant 0 : index
    %46 = vector.load %arg10[%c0_25, %c0_26] : memref<1x512xf32, #tpu.memory_space<vmem>>, vector<1x512xf32>
    %47 = vector.broadcast %46 : vector<1x512xf32> to vector<16x512xf32>
    %48 = arith.subf %45, %47 : vector<16x512xf32>
    %c0_27 = arith.constant 0 : index
    %c0_28 = arith.constant 0 : index
    %49 = vector.load %arg11[%c0_27, %c0_28] : memref<1x512xf32, #tpu.memory_space<vmem>>, vector<1x512xf32>
    %50 = vector.broadcast %49 : vector<1x512xf32> to vector<16x512xf32>
    %51 = arith.mulf %48, %50 : vector<16x512xf32>
    %52 = arith.addf %17, %39 : vector<16x512xf32>
    %53 = arith.mulf %51, %51 : vector<16x512xf32>
    %cst_29 = arith.constant 5.000000e-01 : f32
    %54 = vector.broadcast %cst_29 : f32 to vector<16x512xf32>
    %55 = arith.mulf %54, %53 : vector<16x512xf32>
    %56 = arith.addf %52, %55 : vector<16x512xf32>
    %57 = vector.extract_strided_slice %23 {offsets = [0, 0], sizes = [16, 256], strides = [1, 1]} : vector<16x512xf32> to vector<16x256xf32>
    %58 = vector.extract_strided_slice %23 {offsets = [0, 256], sizes = [16, 256], strides = [1, 1]} : vector<16x512xf32> to vector<16x256xf32>
    %59 = arith.truncf %58 : vector<16x256xf32> to vector<16x256xbf16>
    %c0_30 = arith.constant 0 : index
    %c0_31 = arith.constant 0 : index
    %60 = vector.load %arg12[%c0_30, %c0_31] : memref<256x128xbf16, #tpu.memory_space<vmem>>, vector<256x128xbf16>
    %cst_32 = arith.constant dense<0.000000e+00> : vector<16x128xf32>
    %61 = tpu.matmul %59, %60, %cst_32 {dimension_numbers = #tpu.dot_dimension_numbers<[1], [0], [0], [1], [0, 0, 1, 1], [], []>} : vector<16x256xbf16>, vector<256x128xbf16>, vector<16x128xf32> -> vector<16x128xf32>
    %c0_33 = arith.constant 0 : index
    %c0_34 = arith.constant 0 : index
    %62 = vector.load %arg13[%c0_33, %c0_34] : memref<1x128xf32, #tpu.memory_space<vmem>>, vector<1x128xf32>
    %63 = vector.broadcast %62 : vector<1x128xf32> to vector<16x128xf32>
    %64 = arith.addf %61, %63 : vector<16x128xf32>
    %cst_35 = arith.constant 0.000000e+00 : f32
    %65 = vector.broadcast %cst_35 : f32 to vector<16x128xf32>
    %66 = arith.maximumf %64, %65 : vector<16x128xf32>
    %67 = arith.truncf %66 : vector<16x128xf32> to vector<16x128xbf16>
    %c0_36 = arith.constant 0 : index
    %c0_37 = arith.constant 0 : index
    %68 = vector.load %arg14[%c0_36, %c0_37] : memref<128x512xbf16, #tpu.memory_space<vmem>>, vector<128x512xbf16>
    %cst_38 = arith.constant dense<0.000000e+00> : vector<16x512xf32>
    %69 = tpu.matmul %67, %68, %cst_38 {dimension_numbers = #tpu.dot_dimension_numbers<[1], [0], [0], [1], [0, 0, 1, 1], [], []>} : vector<16x128xbf16>, vector<128x512xbf16>, vector<16x512xf32> -> vector<16x512xf32>
    %c0_39 = arith.constant 0 : index
    %c0_40 = arith.constant 0 : index
    %70 = vector.load %arg15[%c0_39, %c0_40] : memref<1x512xf32, #tpu.memory_space<vmem>>, vector<1x512xf32>
    %71 = vector.broadcast %70 : vector<1x512xf32> to vector<16x512xf32>
    %72 = arith.addf %69, %71 : vector<16x512xf32>
    %73 = vector.extract_strided_slice %72 {offsets = [0, 0], sizes = [16, 256], strides = [1, 1]} : vector<16x512xf32> to vector<16x256xf32>
    %74 = math.tanh %73 : vector<16x256xf32>
    %75 = vector.extract_strided_slice %72 {offsets = [0, 256], sizes = [16, 256], strides = [1, 1]} : vector<16x512xf32> to vector<16x256xf32>
    %76 = arith.subf %57, %75 : vector<16x256xf32>
    %cst_41 = arith.constant 0.000000e+00 : f32
    %77 = vector.broadcast %cst_41 : f32 to vector<16x256xf32>
    %78 = arith.subf %77, %74 : vector<16x256xf32>
    %79 = math.exp %78 : vector<16x256xf32>
    %80 = arith.mulf %76, %79 : vector<16x256xf32>
    %81 = arith.truncf %80 : vector<16x256xf32> to vector<16x256xbf16>
    %c0_42 = arith.constant 0 : index
    %c0_43 = arith.constant 0 : index
    %82 = vector.load %arg16[%c0_42, %c0_43] : memref<256x128xbf16, #tpu.memory_space<vmem>>, vector<256x128xbf16>
    %cst_44 = arith.constant dense<0.000000e+00> : vector<16x128xf32>
    %83 = tpu.matmul %81, %82, %cst_44 {dimension_numbers = #tpu.dot_dimension_numbers<[1], [0], [0], [1], [0, 0, 1, 1], [], []>} : vector<16x256xbf16>, vector<256x128xbf16>, vector<16x128xf32> -> vector<16x128xf32>
    %c0_45 = arith.constant 0 : index
    %c0_46 = arith.constant 0 : index
    %84 = vector.load %arg17[%c0_45, %c0_46] : memref<1x128xf32, #tpu.memory_space<vmem>>, vector<1x128xf32>
    %85 = vector.broadcast %84 : vector<1x128xf32> to vector<16x128xf32>
    %86 = arith.addf %83, %85 : vector<16x128xf32>
    %cst_47 = arith.constant 0.000000e+00 : f32
    %87 = vector.broadcast %cst_47 : f32 to vector<16x128xf32>
    %88 = arith.maximumf %86, %87 : vector<16x128xf32>
    %89 = arith.truncf %88 : vector<16x128xf32> to vector<16x128xbf16>
    %c0_48 = arith.constant 0 : index
    %c0_49 = arith.constant 0 : index
    %90 = vector.load %arg18[%c0_48, %c0_49] : memref<128x512xbf16, #tpu.memory_space<vmem>>, vector<128x512xbf16>
    %cst_50 = arith.constant dense<0.000000e+00> : vector<16x512xf32>
    %91 = tpu.matmul %89, %90, %cst_50 {dimension_numbers = #tpu.dot_dimension_numbers<[1], [0], [0], [1], [0, 0, 1, 1], [], []>} : vector<16x128xbf16>, vector<128x512xbf16>, vector<16x512xf32> -> vector<16x512xf32>
    %c0_51 = arith.constant 0 : index
    %c0_52 = arith.constant 0 : index
    %92 = vector.load %arg19[%c0_51, %c0_52] : memref<1x512xf32, #tpu.memory_space<vmem>>, vector<1x512xf32>
    %93 = vector.broadcast %92 : vector<1x512xf32> to vector<16x512xf32>
    %94 = arith.addf %91, %93 : vector<16x512xf32>
    %95 = vector.extract_strided_slice %94 {offsets = [0, 0], sizes = [16, 256], strides = [1, 1]} : vector<16x512xf32> to vector<16x256xf32>
    %96 = math.tanh %95 : vector<16x256xf32>
    %97 = vector.extract_strided_slice %94 {offsets = [0, 256], sizes = [16, 256], strides = [1, 1]} : vector<16x512xf32> to vector<16x256xf32>
    %98 = arith.subf %58, %97 : vector<16x256xf32>
    %cst_53 = arith.constant 0.000000e+00 : f32
    %99 = vector.broadcast %cst_53 : f32 to vector<16x256xf32>
    %100 = arith.subf %99, %96 : vector<16x256xf32>
    %101 = math.exp %100 : vector<16x256xf32>
    %102 = arith.mulf %98, %101 : vector<16x256xf32>
    %c0_54 = arith.constant 0 : index
    %c0_55 = arith.constant 0 : index
    %103 = vector.load %arg20[%c0_54, %c0_55] : memref<1x512xf32, #tpu.memory_space<vmem>>, vector<1x256xf32>
    %104 = vector.broadcast %103 : vector<1x256xf32> to vector<16x256xf32>
    %105 = arith.subf %80, %104 : vector<16x256xf32>
    %c0_56 = arith.constant 0 : index
    %c0_57 = arith.constant 0 : index
    %106 = vector.load %arg21[%c0_56, %c0_57] : memref<1x512xf32, #tpu.memory_space<vmem>>, vector<1x256xf32>
    %107 = vector.broadcast %106 : vector<1x256xf32> to vector<16x256xf32>
    %108 = arith.mulf %105, %107 : vector<16x256xf32>
    %c0_58 = arith.constant 0 : index
    %c256 = arith.constant 256 : index
    %109 = vector.load %arg20[%c0_58, %c256] : memref<1x512xf32, #tpu.memory_space<vmem>>, vector<1x256xf32>
    %110 = vector.broadcast %109 : vector<1x256xf32> to vector<16x256xf32>
    %111 = arith.subf %102, %110 : vector<16x256xf32>
    %c0_59 = arith.constant 0 : index
    %c256_60 = arith.constant 256 : index
    %112 = vector.load %arg21[%c0_59, %c256_60] : memref<1x512xf32, #tpu.memory_space<vmem>>, vector<1x256xf32>
    %113 = vector.broadcast %112 : vector<1x256xf32> to vector<16x256xf32>
    %114 = arith.mulf %111, %113 : vector<16x256xf32>
    %115 = arith.addf %74, %96 : vector<16x256xf32>
    %116 = arith.mulf %108, %108 : vector<16x256xf32>
    %117 = arith.mulf %114, %114 : vector<16x256xf32>
    %118 = arith.addf %116, %117 : vector<16x256xf32>
    %cst_61 = arith.constant 5.000000e-01 : f32
    %119 = vector.broadcast %cst_61 : f32 to vector<16x256xf32>
    %120 = arith.mulf %119, %118 : vector<16x256xf32>
    %121 = arith.addf %115, %120 : vector<16x256xf32>
    %cst_62 = arith.constant dense<0.000000e+00> : vector<16xf32>
    %122 = vector.multi_reduction <add>, %56, %cst_62 [1] : vector<16x512xf32> to vector<16xf32>
    %123 = vector.shape_cast %122 : vector<16xf32> to vector<16x1xf32>
    %cst_63 = arith.constant dense<0.000000e+00> : vector<16xf32>
    %124 = vector.multi_reduction <add>, %121, %cst_63 [1] : vector<16x256xf32> to vector<16xf32>
    %125 = vector.shape_cast %124 : vector<16xf32> to vector<16x1xf32>
    %126 = arith.addf %123, %125 : vector<16x1xf32>
    %c0_64 = arith.constant 0 : index
    %c0_65 = arith.constant 0 : index
    %127 = vector.load %arg22[%c0_64, %c0_65] : memref<1x1xf32, #tpu.memory_space<vmem>>, vector<1x1xf32>
    %128 = vector.extract %127[0, 0] : f32 from vector<1x1xf32>
    %129 = vector.broadcast %128 : f32 to vector<16x1xf32>
    %130 = arith.subf %126, %129 : vector<16x1xf32>
    %c0_66 = arith.constant 0 : index
    %c0_67 = arith.constant 0 : index
    %131 = vector.load %arg23[%c0_66, %c0_67] : memref<16x1xf32, #tpu.memory_space<vmem>>, vector<16x1xf32>
    tpu.vector_store %arg23[%c0_66, %c0_67], %130 {strides = array<i32>} : memref<16x1xf32, #tpu.memory_space<vmem>>, vector<16x1xf32>,
    return
  }
  func.func @transform_0(%arg0: i32) -> (i32, i32) {
    %c0_i32 = arith.constant 0 : i32
    %c0_i32_0 = arith.constant 0 : i32
    return %arg0, %c0_i32 : i32, i32
  }
  func.func @transform_1(%arg0: i32) -> (i32, i32) {
    %c0_i32 = arith.constant 0 : i32
    %c0_i32_0 = arith.constant 0 : i32
    %c0_i32_1 = arith.constant 0 : i32
    return %c0_i32, %c0_i32_0 : i32, i32
  }
  func.func @transform_2(%arg0: i32) -> (i32, i32) {
    %c0_i32 = arith.constant 0 : i32
    %c0_i32_0 = arith.constant 0 : i32
    %c0_i32_1 = arith.constant 0 : i32
    return %c0_i32, %c0_i32_0 : i32, i32
  }
  func.func @transform_3(%arg0: i32) -> (i32, i32) {
    %c0_i32 = arith.constant 0 : i32
    %c0_i32_0 = arith.constant 0 : i32
    %c0_i32_1 = arith.constant 0 : i32
    return %c0_i32, %c0_i32_0 : i32, i32
  }
  func.func @transform_4(%arg0: i32) -> (i32, i32) {
    %c0_i32 = arith.constant 0 : i32
    %c0_i32_0 = arith.constant 0 : i32
    %c0_i32_1 = arith.constant 0 : i32
    return %c0_i32, %c0_i32_0 : i32, i32
  }
  func.func @transform_5(%arg0: i32) -> (i32, i32) {
    %c0_i32 = arith.constant 0 : i32
    %c0_i32_0 = arith.constant 0 : i32
    %c0_i32_1 = arith.constant 0 : i32
    return %c0_i32, %c0_i32_0 : i32, i32
  }
  func.func @transform_6(%arg0: i32) -> (i32, i32) {
    %c0_i32 = arith.constant 0 : i32
    %c0_i32_0 = arith.constant 0 : i32
    %c0_i32_1 = arith.constant 0 : i32
    return %c0_i32, %c0_i32_0 : i32, i32
  }
  func.func @transform_7(%arg0: i32) -> (i32, i32) {
    %c0_i32 = arith.constant 0 : i32
    %c0_i32_0 = arith.constant 0 : i32
    %c0_i32_1 = arith.constant 0 : i32
    return %c0_i32, %c0_i32_0 : i32, i32
  }
  func.func @transform_8(%arg0: i32) -> (i32, i32) {
    %c0_i32 = arith.constant 0 : i32
    %c0_i32_0 = arith.constant 0 : i32
    %c0_i32_1 = arith.constant 0 : i32
    return %c0_i32, %c0_i32_0 : i32, i32
  }
  func.func @transform_9(%arg0: i32) -> (i32, i32) {
    %c0_i32 = arith.constant 0 : i32
    %c0_i32_0 = arith.constant 0 : i32
    %c0_i32_1 = arith.constant 0 : i32
    return %c0_i32, %c0_i32_0 : i32, i32
  }
  func.func @transform_10(%arg0: i32) -> (i32, i32) {
    %c0_i32 = arith.constant 0 : i32
    %c0_i32_0 = arith.constant 0 : i32
    %c0_i32_1 = arith.constant 0 : i32
    return %c0_i32, %c0_i32_0 : i32, i32
  }
  func.func @transform_11(%arg0: i32) -> (i32, i32) {
    %c0_i32 = arith.constant 0 : i32
    %c0_i32_0 = arith.constant 0 : i32
    %c0_i32_1 = arith.constant 0 : i32
    return %c0_i32, %c0_i32_0 : i32, i32
  }
  func.func @transform_12(%arg0: i32) -> (i32, i32) {
    %c0_i32 = arith.constant 0 : i32
    %c0_i32_0 = arith.constant 0 : i32
    %c0_i32_1 = arith.constant 0 : i32
    return %c0_i32, %c0_i32_0 : i32, i32
  }
  func.func @transform_13(%arg0: i32) -> (i32, i32) {
    %c0_i32 = arith.constant 0 : i32
    %c0_i32_0 = arith.constant 0 : i32
    %c0_i32_1 = arith.constant 0 : i32
    return %c0_i32, %c0_i32_0 : i32, i32
  }
  func.func @transform_14(%arg0: i32) -> (i32, i32) {
    %c0_i32 = arith.constant 0 : i32
    %c0_i32_0 = arith.constant 0 : i32
    %c0_i32_1 = arith.constant 0 : i32
    return %c0_i32, %c0_i32_0 : i32, i32
  }
  func.func @transform_15(%arg0: i32) -> (i32, i32) {
    %c0_i32 = arith.constant 0 : i32
    %c0_i32_0 = arith.constant 0 : i32
    %c0_i32_1 = arith.constant 0 : i32
    return %c0_i32, %c0_i32_0 : i32, i32
  }
  func.func @transform_16(%arg0: i32) -> (i32, i32) {
    %c0_i32 = arith.constant 0 : i32
    %c0_i32_0 = arith.constant 0 : i32
    %c0_i32_1 = arith.constant 0 : i32
    return %c0_i32, %c0_i32_0 : i32, i32
  }
  func.func @transform_17(%arg0: i32) -> (i32, i32) {
    %c0_i32 = arith.constant 0 : i32
    %c0_i32_0 = arith.constant 0 : i32
    %c0_i32_1 = arith.constant 0 : i32
    return %c0_i32, %c0_i32_0 : i32, i32
  }
  func.func @transform_18(%arg0: i32) -> (i32, i32) {
    %c0_i32 = arith.constant 0 : i32
    %c0_i32_0 = arith.constant 0 : i32
    %c0_i32_1 = arith.constant 0 : i32
    return %c0_i32, %c0_i32_0 : i32, i32
  }
  func.func @transform_19(%arg0: i32) -> (i32, i32) {
    %c0_i32 = arith.constant 0 : i32
    %c0_i32_0 = arith.constant 0 : i32
    %c0_i32_1 = arith.constant 0 : i32
    return %c0_i32, %c0_i32_0 : i32, i32
  }
  func.func @transform_20(%arg0: i32) -> (i32, i32) {
    %c0_i32 = arith.constant 0 : i32
    %c0_i32_0 = arith.constant 0 : i32
    %c0_i32_1 = arith.constant 0 : i32
    return %c0_i32, %c0_i32_0 : i32, i32
  }
  func.func @transform_21(%arg0: i32) -> (i32, i32) {
    %c0_i32 = arith.constant 0 : i32
    %c0_i32_0 = arith.constant 0 : i32
    %c0_i32_1 = arith.constant 0 : i32
    return %c0_i32, %c0_i32_0 : i32, i32
  }
  func.func @transform_22(%arg0: i32) -> (i32, i32) {
    %c0_i32 = arith.constant 0 : i32
    %c0_i32_0 = arith.constant 0 : i32
    return %arg0, %c0_i32 : i32, i32
  }
}

</mosaic_0001>

<bundles_post_ra>
// kernel: tpu_custom_call.1
= control target key start
LH: loop header
LB: loop body
LE: loop exit
PB: predicated region body
PF: predicated region fallthrough
CT: control target
= control target key end

     0   :  { %s6332_s0 = inlined_call_operand.hbm [shape: f32[32,1024], index: 0, kind: input, shape index: {}]   ;;  %s6333_s1 = inlined_call_operand.hbm [shape: bf16[512,128], index: 1, kind: input, shape index: {}]   ;;  %s6334_s2 = inlined_call_operand.vmem [shape: f32[1,128], index: 2, kind: input, shape index: {}]   ;;  %s6335_s3 = inlined_call_operand.hbm [shape: bf16[128,1024], index: 3, kind: input, shape index: {}]   ;;  %s6336_s4 = inlined_call_operand.vmem [shape: f32[1,1024], index: 4, kind: input, shape index: {}]   ;;  %s6337_s5 = inlined_call_operand.hbm [shape: bf16[512,128], index: 5, kind: input, shape index: {}]   ;;  %s6338_s6 = inlined_call_operand.hbm [shape: f32[1,128], index: 6, kind: input, shape index: {}]   ;;  %s6339_s7 = inlined_call_operand.hbm [shape: bf16[128,1024], index: 7, kind: input, shape index: {}]   ;;  %s6340_s8 = inlined_call_operand.vmem [shape: f32[1,1024], index: 8, kind: input, shape index: {}]   ;;  %s6341_s9 = inlined_call_operand.vmem [shape: f32[1,512], index: 9, kind: input, shape index: {}]   ;;  %s6342_s10 = inlined_call_operand.vmem [shape: f32[1,512], index: 10, kind: input, shape index: {}]   ;;  %s6343_s11 = inlined_call_operand.hbm [shape: bf16[256,128], index: 11, kind: input, shape index: {}]   ;;  %s6344_s12 = inlined_call_operand.vmem [shape: f32[1,128], index: 12, kind: input, shape index: {}]   ;;  %s6345_s13 = inlined_call_operand.hbm [shape: bf16[128,512], index: 13, kind: input, shape index: {}]   ;;  %s6346_s14 = inlined_call_operand.vmem [shape: f32[1,512], index: 14, kind: input, shape index: {}]   ;;  %s6347_s15 = inlined_call_operand.hbm [shape: bf16[256,128], index: 15, kind: input, shape index: {}]   ;;  %s6348_s16 = inlined_call_operand.vmem [shape: f32[1,128], index: 16, kind: input, shape index: {}]   ;;  %s6349_s17 = inlined_call_operand.hbm [shape: bf16[128,512], index: 17, kind: input, shape index: {}]   ;;  %s6350_s18 = inlined_call_operand.vmem [shape: f32[1,512], index: 18, kind: input, shape index: {}]   ;;  %s6351_s19 = inlined_call_operand.vmem [shape: f32[1,512], index: 19, kind: input, shape index: {}]   ;;  %s6352_s20 = inlined_call_operand.vmem [shape: f32[1,512], index: 20, kind: input, shape index: {}]   ;;  %s6353_s21 = inlined_call_operand.<no memory space> [shape: f32[1,1], index: 21, kind: input, shape index: {}]   ;;  %s6354_s22 = inlined_call_operand.vmem [shape: f32[32,1], index: 22, kind: output, shape index: {}]  }
   0x1   :  { %6374 = sst [smem:[#allocation25_spill]] %s6332_s0  ;;  %v27_v0 = vstv %s6353_s21 }
   0x2   :  { %6375 = sst [smem:[#allocation26_spill]] %s6333_s1  ;;  %28 = vst [vmem:[#allocation2] sm:$0x1] %v27_v0 }
   0x3   :  { %6376 = sst [smem:[#allocation27_spill]] %s6334_s2 }
   0x4   :  { %6377 = sst [smem:[#allocation28_spill]] %s6335_s3 }
   0x5   :  { %6378 = sst [smem:[#allocation29_spill]] %s6336_s4 }
   0x6   :  { %6379 = sst [smem:[#allocation30_spill]] %s6337_s5 }
   0x7   :  { %6380 = sst [smem:[#allocation31_spill]] %s6338_s6 }
   0x8   :  { %6381 = sst [smem:[#allocation32_spill]] %s6339_s7 }
   0x9   :  { %6382 = sst [smem:[#allocation33_spill]] %s6342_s10 }
   0xa   :  { %6383 = sst [smem:[#allocation34_spill]] %s6343_s11 }
   0xb   :  { %6384 = sst [smem:[#allocation35_spill]] %s6344_s12 }
   0xc   :  { %6385 = sst [smem:[#allocation36_spill]] %s6346_s14 }
   0xd   :  { %6386 = sst [smem:[#allocation37_spill]] %s6348_s16 }
   0xe   :  { %6387 = sst [smem:[#allocation38_spill]] %s6350_s18 }
   0xf   :  { %6388 = sst [smem:[#allocation39_spill]] %s6351_s19 }
  0x10   :  { %6389 = sst [smem:[#allocation40_spill]] %s6352_s20 }
  0x11   :  { %6390 = sst [smem:[#allocation41_spill]] %s6354_s22 }
  0x12   :  { %29 = vsyncpa [#allocation4], 0 }
  0x13   :  { %31 = vsyncpa [#allocation4 + $0x1], 0 }
  0x14   :  { %32 = vsyncpa [#allocation6], 0 }
  0x15   :  { %33 = vsyncpa [#allocation9], 0 }
  0x16   :  { %34 = vsyncpa [#allocation12], 0 }
  0x17   :  { %35 = vsyncpa [#allocation15], 0 }
  0x18   :  { %36 = vsyncpa [#allocation18], 0  ;;  %s5586_s29 = smov 0   ;;  %s5588_s30 = smov 0  }
  0x19   :  { %s5590_s4 = smov 0   ;;  %s5592_s0 = smov 0  }
  0x1a LB: > { %s5450_s21 = smov [#allocation5]   ;;  %s6360_s1 = sadd.s32 4294967295, %s5448_s0   ;;  %s5448_s0 = sphi %s5592_s0, %s6427_s0   ;;  %s5444_s4 = sphi %s5590_s4, %s6426_s4   ;;  %s5440_s30 = sphi %s5588_s30, %s6425_s30   ;;  %s5436_s29 = sphi %s5586_s29, %s6424_s29  }
  0x1b   : > { %s552_s23 = sshll.u32 %s5450_s21, 4  ;;  %p4220_p0 = scmp.ge.s32.totalorder %s5448_s0, 1  ;;  %s5615_s23 = int_to_ptr.vmem [resolvable:$true] %s552_s23 }
  0x1c   : > { %p5610_p1 = scmp.eq.s32.totalorder %s6360_s1, 0  ;;  %p540_p2 = scmp.lt.s32.totalorder %s5448_s0, 3 }
  0x1d   : > { %s5451_s6 = smov [#allocation8]   ;;  %s5452_s2 = smov [#allocation11]  }
  0x1e   : > { %s6391_s5 = scalar_select %p5610_p1, 1, 0 }
  0x1f   : > { %p5617_p3 = pnand %p4220_p0, %p540_p2  ;;  %s584_s25 = sshll.u32 %s5451_s6, 4  ;;  %s5629_s25 = int_to_ptr.vmem [resolvable:$true] %s584_s25 }
  0x20   : > { %s5631_s27 = sshll.u32 %s5452_s2, 4  ;;  %s6394_s21 = sld [smem:[#allocation26_spill]]  ;;  %s609_s27 = int_to_ptr.vmem [resolvable:$true] %s5631_s27 }
  0x21   : > { %s6392_s24 = scalar_select %p5617_p3, 1, 0 }
  0x22   : > { %p4716_p4 = pneg %p5617_p3 }
  0x24   : > { %p5625_p5 = pnand %p4716_p4, %p5610_p1 }
  0x26   : > { %s5112_s1 = scalar_lea.hbm %s6394_s21, 4096  ;;  %p5641_p7 = pneg %p5625_p5 }
  0x27   : > { %p5113_p6 = scmp.ne.s32.totalorder %s6394_s21, %s5112_s1  ;;  %p5119_p10 = scmp.lt.u32.totalorder %s5112_s1, %s6394_s21 }
  0x29   : > { %p5115_p8 = pnand %p5641_p7, %p5113_p6 }
  0x2b   : > { %p5116_p9 = pneg %p5115_p8 }
  0x2d   : > { %p5121_p11 = pnand %p5119_p10, %p5116_p9 }
  0x2f   : > { %5124 = shalt.err (!%p5121_p11)
}
  0x30   : > { %s5125_s20 = scalar_lea.vmem %s5615_s23, 4096  ;;  %p5133_p2 = scmp.lt.s32.totalorder %s5615_s23, %s5615_s23 }
  0x31   : > { %p5126_p12 = scmp.ne.s32.totalorder %s5615_s23, %s5125_s20  ;;  %p5134_p4 = scmp.lt.s32.totalorder %s5125_s20, %s5125_s20 }
  0x33   : > { %p5128_p13 = pnand %p5126_p12, %p5641_p7  ;;  %p5135_p6 = por %p5134_p4, %p5133_p2 }
  0x35   : > { %p5129_p0 = pneg %p5128_p13 }
  0x37   : > { %p5136_p8 = pnand %p5135_p6, %p5129_p0 }
  0x39   : > { %5139 = shalt.err (!%p5136_p8)
}
  0x3a   : > { %s6366_s22 = smov 64   ;;  %s6368_s19 = smov 4  }
  0x3b   : > { %4719 = dma.hbm_to_vmem [thread:$0]  (!%p5625_p5), %s6394_s21, 4096, %s5615_s23, [#allocation6], %s6366_s22, %s6366_s22, %s6368_s19  }
  0x3c   : > { %s6396_s18 = sld [smem:[#allocation30_spill]] }
  0x42   : > { %s5140_s20 = scalar_lea.hbm %s6396_s18, 4096 }
  0x43   : > { %p5141_p9 = scmp.ne.s32.totalorder %s6396_s18, %s5140_s20  ;;  %p5147_p12 = scmp.lt.u32.totalorder %s5140_s20, %s6396_s18 }
  0x45   : > { %p5143_p10 = pnand %p5141_p9, %p5641_p7 }
  0x47   : > { %p5144_p11 = pneg %p5143_p10 }
  0x49   : > { %p5149_p13 = pnand %p5147_p12, %p5144_p11 }
  0x4b   : > { %5152 = shalt.err (!%p5149_p13)
}
  0x4c   : > { %s5153_s23 = scalar_lea.vmem %s5629_s25, 4096  ;;  %p5161_p6 = scmp.lt.s32.totalorder %s5629_s25, %s5629_s25 }
  0x4d   : > { %p5154_p0 = scmp.ne.s32.totalorder %s5629_s25, %s5153_s23  ;;  %p5162_p8 = scmp.lt.s32.totalorder %s5153_s23, %s5153_s23 }
  0x4f   : > { %p5156_p2 = pnand %p5154_p0, %p5641_p7  ;;  %p5163_p9 = por %p5162_p8, %p5161_p6 }
  0x51   : > { %p5157_p4 = pneg %p5156_p2 }
  0x53   : > { %p5164_p10 = pnand %p5163_p9, %p5157_p4 }
  0x55   : > { %5167 = shalt.err (!%p5164_p10)
}
  0x56   : > { %4725 = dma.hbm_to_vmem [thread:$0]  (!%p5625_p5), %s6396_s18, 4096, %s5629_s25, [#allocation9], %s6366_s22, %s6366_s22, %s6368_s19  }
  0x57   : > { %s6397_s7 = sld [smem:[#allocation32_spill]] }
  0x5d   : > { %s5168_s1 = scalar_lea.hbm %s6397_s7, 8192 }
  0x5e   : > { %p5169_p11 = scmp.ne.s32.totalorder %s6397_s7, %s5168_s1  ;;  %p5175_p0 = scmp.lt.u32.totalorder %s5168_s1, %s6397_s7 }
  0x60   : > { %p5171_p12 = pnand %p5169_p11, %p5641_p7 }
  0x62   : > { %p5172_p13 = pneg %p5171_p12 }
  0x64   : > { %p5177_p2 = pnand %p5175_p0, %p5172_p13 }
  0x66   : > { %5180 = shalt.err (!%p5177_p2)
}
  0x67   : > { %s5181_s23 = scalar_lea.vmem %s609_s27, 8192  ;;  %p5189_p9 = scmp.lt.s32.totalorder %s609_s27, %s609_s27 }
  0x68   : > { %p5182_p4 = scmp.ne.s32.totalorder %s609_s27, %s5181_s23  ;;  %p5190_p10 = scmp.lt.s32.totalorder %s5181_s23, %s5181_s23 }
  0x6a   : > { %p5184_p6 = pnand %p5182_p4, %p5641_p7  ;;  %p5191_p3 = por %p5190_p10, %p5189_p9 }
  0x6c   : > { %p5185_p8 = pneg %p5184_p6 }
  0x6e   : > { %p5192_p1 = pnand %p5191_p3, %p5185_p8 }
  0x70   : > { %5195 = shalt.err (!%p5192_p1)
}
  0x71   : > { %s6370_s25 = smov 512   ;;  %s6371_s10 = smov 32  }
  0x72   : > { %4731 = dma.hbm_to_vmem [thread:$0]  (!%p5625_p5), %s6397_s7, 8192, %s609_s27, [#allocation12], %s6370_s25, %s6370_s25, %s6371_s10  }
  0x73   : > { %s5457_s16 = smov [#allocation14]   ;;  %s5196_s2 = scalar_lea.hbm %s6345_s13, 4096 }
  0x74   : > { %s646_s1 = sshll.u32 %s5457_s16, 4  ;;  %p5197_p1 = scmp.ne.s32.totalorder %s6345_s13, %s5196_s2  ;;  %s647_s1 = int_to_ptr.vmem [resolvable:$true] %s646_s1 }
  0x75   : > { %p5203_p12 = scmp.lt.u32.totalorder %s5196_s2, %s6345_s13 }
  0x76   : > { %p5199_p3 = pnand %p5197_p1, %p5641_p7 }
  0x78   : > { %p5200_p11 = pneg %p5199_p3 }
  0x7a   : > { %p5205_p13 = pnand %p5203_p12, %p5200_p11 }
  0x7c   : > { %5208 = shalt.err (!%p5205_p13)
}
  0x7d   : > { %s5209_s27 = scalar_lea.vmem %s647_s1, 4096  ;;  %p5217_p6 = scmp.lt.s32.totalorder %s647_s1, %s647_s1 }
  0x7e   : > { %p5210_p0 = scmp.ne.s32.totalorder %s647_s1, %s5209_s27  ;;  %p5218_p8 = scmp.lt.s32.totalorder %s5209_s27, %s5209_s27 }
  0x80   : > { %p5212_p2 = pnand %p5210_p0, %p5641_p7  ;;  %p5219_p9 = por %p5218_p8, %p5217_p6 }
  0x82   : > { %p5213_p4 = pneg %p5212_p2 }
  0x84   : > { %p5220_p10 = pnand %p5219_p9, %p5213_p4 }
  0x86   : > { %5223 = shalt.err (!%p5220_p10)
}
  0x87   : > { %s6372_s12 = smov 256   ;;  %s6373_s14 = smov 16  }
  0x88   : > { %4737 = dma.hbm_to_vmem [thread:$0]  (!%p5625_p5), %s6345_s13, 4096, %s647_s1, [#allocation15], %s6372_s12, %s6372_s12, %s6373_s14  }
  0x89   : > { %s5460_s16 = smov [#allocation7]   ;;  %s5461_s28 = smov [#allocation10]  }
  0x8a   : > { %s568_s3 = sshll.u32 %s5460_s16, 4  ;;  %s598_s2 = sshll.u32 %s5461_s28, 4  ;;  %s569_s3 = int_to_ptr.vmem [resolvable:$true] %s568_s3  ;;  %s5734_s2 = int_to_ptr.vmem [resolvable:$true] %s598_s2 }
  0x8b   : > { %s6398_s27 = sld [smem:[#allocation28_spill]] }
  0x91   : > { %s5224_s25 = scalar_lea.hbm %s6398_s27, 8192 }
  0x92   : > { %p5225_p1 = scmp.ne.s32.totalorder %s6398_s27, %s5224_s25  ;;  %p5231_p12 = scmp.lt.u32.totalorder %s5224_s25, %s6398_s27 }
  0x94   : > { %p5227_p3 = pnand %p5225_p1, %p5641_p7 }
  0x96   : > { %p5228_p11 = pneg %p5227_p3 }
  0x98   : > { %p5233_p13 = pnand %p5231_p12, %p5228_p11 }
  0x9a   : > { %5236 = shalt.err (!%p5233_p13)
}
  0x9b   : > { %s5237_s19 = scalar_lea.vmem %s569_s3, 8192  ;;  %p5245_p6 = scmp.lt.s32.totalorder %s569_s3, %s569_s3 }
  0x9c   : > { %p5238_p0 = scmp.ne.s32.totalorder %s569_s3, %s5237_s19  ;;  %p5246_p8 = scmp.lt.s32.totalorder %s5237_s19, %s5237_s19 }
  0x9e   : > { %p5240_p2 = pnand %p5238_p0, %p5641_p7  ;;  %p5247_p9 = por %p5246_p8, %p5245_p6 }
  0xa0   : > { %p5241_p4 = pneg %p5240_p2 }
  0xa2   : > { %p5248_p10 = pnand %p5247_p9, %p5241_p4 }
  0xa4   : > { %5251 = shalt.err (!%p5248_p10)
}
  0xa5   : > { %s6399_s7 = smov 32   ;;  %s6400_s10 = smov 512  }
  0xa6   : > { %4722 = dma.hbm_to_vmem [thread:$0]  (!%p5625_p5), %s6398_s27, 8192, %s569_s3, [#allocation6], %s6400_s10, %s6400_s10, %s6399_s7  }
  0xa7   : > { %s6401_s23 = sld [smem:[#allocation31_spill]] }
  0xad   : > { %s5252_s22 = scalar_lea.hbm %s6401_s23, 16 }
  0xae   : > { %p5253_p1 = scmp.ne.s32.totalorder %s6401_s23, %s5252_s22  ;;  %p5259_p12 = scmp.lt.u32.totalorder %s5252_s22, %s6401_s23 }
  0xb0   : > { %p5255_p3 = pnand %p5253_p1, %p5641_p7 }
  0xb2   : > { %p5256_p11 = pneg %p5255_p3 }
  0xb4   : > { %p5261_p13 = pnand %p5259_p12, %p5256_p11 }
  0xb6   : > { %5264 = shalt.err (!%p5261_p13)
}
  0xb7   : > { %s5265_s3 = scalar_lea.vmem %s5734_s2, 16  ;;  %s5272_s12 = scalar_lea.vmem %s5734_s2, 32 }
  0xb8   : > { %p5266_p0 = scmp.ne.s32.totalorder %s5734_s2, %s5265_s3  ;;  %p5273_p6 = scmp.lt.s32.totalorder %s5734_s2, %s5734_s2 }
  0xb9   : > { %p5274_p8 = scmp.lt.s32.totalorder %s5272_s12, %s5265_s3 }
  0xba   : > { %p5268_p2 = pnand %p5266_p0, %p5641_p7 }
  0xbb   : > { %p5275_p9 = por %p5274_p8, %p5273_p6 }
  0xbc   : > { %p5269_p4 = pneg %p5268_p2 }
  0xbe   : > { %p5276_p10 = pnand %p5275_p9, %p5269_p4 }
  0xc0   : > { %5279 = shalt.err (!%p5276_p10)
}
  0xc1   : > { %4728 = dma.hbm_to_vmem [thread:$0]  (!%p5625_p5), %s6401_s23, 16, %s5734_s2, [#allocation9]  }
  0xc2   : > { %s5462_s10 = smov [#allocation13]   ;;  %s5463_s25 = smov [#allocation16]  }
  0xc3   : > { %s630_s16 = sshll.u32 %s5462_s10, 4  ;;  %s662_s28 = sshll.u32 %s5463_s25, 4  ;;  %s631_s16 = int_to_ptr.vmem [resolvable:$true] %s630_s16  ;;  %s5781_s28 = int_to_ptr.vmem [resolvable:$true] %s662_s28 }
  0xc4   : > { %s6402_s11 = sld [smem:[#allocation34_spill]] }
  0xca   : > { %s5280_s1 = scalar_lea.hbm %s6402_s11, 2048 }
  0xcb   : > { %p5281_p1 = scmp.ne.s32.totalorder %s6402_s11, %s5280_s1  ;;  %p5287_p12 = scmp.lt.u32.totalorder %s5280_s1, %s6402_s11 }
  0xcd   : > { %p5283_p3 = pnand %p5281_p1, %p5641_p7 }
  0xcf   : > { %p5284_p11 = pneg %p5283_p3 }
  0xd1   : > { %p5289_p13 = pnand %p5287_p12, %p5284_p11 }
  0xd3   : > { %5292 = shalt.err (!%p5289_p13)
}
  0xd4   : > { %s5293_s14 = scalar_lea.vmem %s631_s16, 2048  ;;  %p5301_p6 = scmp.lt.s32.totalorder %s631_s16, %s631_s16 }
  0xd5   : > { %p5294_p0 = scmp.ne.s32.totalorder %s631_s16, %s5293_s14  ;;  %p5302_p8 = scmp.lt.s32.totalorder %s5293_s14, %s5293_s14 }
  0xd7   : > { %p5296_p2 = pnand %p5294_p0, %p5641_p7  ;;  %p5303_p9 = por %p5302_p8, %p5301_p6 }
  0xd9   : > { %p5297_p4 = pneg %p5296_p2 }
  0xdb   : > { %p5304_p10 = pnand %p5303_p9, %p5297_p4 }
  0xdd   : > { %5307 = shalt.err (!%p5304_p10)
}
  0xde   : > { %s6403_s7 = smov 4   ;;  %s6404_s10 = smov 64  }
  0xdf   : > { %4734 = dma.hbm_to_vmem [thread:$0]  (!%p5625_p5), %s6402_s11, 2048, %s631_s16, [#allocation12], %s6404_s10, %s6404_s10, %s6403_s7  }
  0xe0   : > { %s5308_s19 = scalar_lea.hbm %s6347_s15, 2048 }
  0xe1   : > { %p5309_p1 = scmp.ne.s32.totalorder %s6347_s15, %s5308_s19  ;;  %p5315_p12 = scmp.lt.u32.totalorder %s5308_s19, %s6347_s15 }
  0xe3   : > { %p5311_p3 = pnand %p5309_p1, %p5641_p7 }
  0xe5   : > { %p5312_p11 = pneg %p5311_p3 }
  0xe7   : > { %p5317_p13 = pnand %p5315_p12, %p5312_p11 }
  0xe9   : > { %5320 = shalt.err (!%p5317_p13)
}
  0xea   : > { %s5321_s16 = scalar_lea.vmem %s5781_s28, 2048  ;;  %p5329_p6 = scmp.lt.s32.totalorder %s5781_s28, %s5781_s28 }
  0xeb   : > { %p5322_p0 = scmp.ne.s32.totalorder %s5781_s28, %s5321_s16  ;;  %p5330_p8 = scmp.lt.s32.totalorder %s5321_s16, %s5321_s16 }
  0xed   : > { %p5324_p2 = pnand %p5322_p0, %p5641_p7  ;;  %p5331_p9 = por %p5330_p8, %p5329_p6 }
  0xef   : > { %p5325_p4 = pneg %p5324_p2 }
  0xf1   : > { %p5332_p10 = pnand %p5331_p9, %p5325_p4 }
  0xf3   : > { %5335 = shalt.err (!%p5332_p10)
}
  0xf4   : > { %4740 = dma.hbm_to_vmem [thread:$0]  (!%p5625_p5), %s6347_s15, 2048, %s5781_s28, [#allocation15], %s6404_s10, %s6404_s10, %s6403_s7  }
  0xf5   : > { %s5464_s22 = smov [#allocation17]   ;;  %s5336_s12 = scalar_lea.hbm %s6349_s17, 4096 }
  0xf6   : > { %s678_s1 = sshll.u32 %s5464_s22, 4  ;;  %p5337_p1 = scmp.ne.s32.totalorder %s6349_s17, %s5336_s12  ;;  %s679_s1 = int_to_ptr.vmem [resolvable:$true] %s678_s1 }
  0xf7   : > { %p5343_p12 = scmp.lt.u32.totalorder %s5336_s12, %s6349_s17 }
  0xf8   : > { %p5339_p3 = pnand %p5337_p1, %p5641_p7 }
  0xfa   : > { %p5340_p11 = pneg %p5339_p3 }
  0xfc   : > { %p5345_p13 = pnand %p5343_p12, %p5340_p11 }
  0xfe   : > { %5348 = shalt.err (!%p5345_p13)
}
  0xff   : > { %s5349_s28 = scalar_lea.vmem %s679_s1, 4096  ;;  %p5357_p6 = scmp.lt.s32.totalorder %s679_s1, %s679_s1 }
 0x100   : > { %p5350_p0 = scmp.ne.s32.totalorder %s679_s1, %s5349_s28  ;;  %p5358_p8 = scmp.lt.s32.totalorder %s5349_s28, %s5349_s28 }
 0x102   : > { %p5352_p2 = pnand %p5350_p0, %p5641_p7  ;;  %p5359_p9 = por %p5358_p8, %p5357_p6 }
 0x104   : > { %p5353_p4 = pneg %p5352_p2 }
 0x106   : > { %p5360_p10 = pnand %p5359_p9, %p5353_p4 }
 0x108   : > { %5363 = shalt.err (!%p5360_p10)
}
 0x109   : > { %s6405_s7 = smov 16   ;;  %s6406_s25 = smov 256  }
 0x10a   : > { %4743 = dma.hbm_to_vmem [thread:$0]  (!%p5625_p5), %s6349_s17, 4096, %s679_s1, [#allocation18], %s6406_s25, %s6406_s25, %s6405_s7  }
 0x10b   : > { %s5852_s26 = sadd.s32 1, %s5448_s0   ;;  %s49_s22 = sadd.s32 1, %s5444_s4 }
 0x10c   : > { %s46_s6 = ssub.s32 %s5448_s0, %s5852_s26  ;;  %p56_p1 = scmp.ne.s32.totalorder %s5444_s4, %s5440_s30 }
 0x10d   : > { %p47_p7 = scmp.eq.s32.totalorder %s46_s6, 0  ;;  %p57_p3 = scmp.eq.s32.totalorder %s5448_s0, 0 }
 0x10e   : > { %p62_p11 = scmp.ne.s32.totalorder %s5440_s30, %s5436_s29  ;;  %p6407_p13 = scmp.ne.s32.totalorder %s6391_s5, 0 }
 0x10f   : > { %s5863_s19 = scalar_select %p47_p7, %s5444_s4, %s49_s22  }
 0x110   : > { %p58_p12 = por %p57_p3, %p56_p1  ;;  %p5867_p0 = por %p6407_p13, %p62_p11 }
 0x111   : > { %p4757_p2 = scmp.lt.s32.totalorder %s5448_s0, 2  ;;  %s704_s12 = sand.u32 1, %s5444_s4  }
 0x112   : > { %s4231_s1 = sshll.u32 %s704_s12, 7  ;;  %s4543_s2 = sshll.u32 %s5448_s0, 11 }
 0x113   : > { %s6409_s28 = sld [smem:[#allocation25_spill]]  ;;  %s708_s29 = scalar_lea.vmem [#allocation3], %s4231_s1 }
 0x114   : > { %s716_s25 = sshll.u32 %s708_s29, 4  ;;  %p5881_p5 = pnand %p4757_p2, %p58_p12  ;;  %s5879_s25 = int_to_ptr.vmem [resolvable:$true] %s716_s25 }
 0x115   : > { %s5885_s20 = scalar_lea.sflag [#allocation4], %s704_s12 }
 0x116   : > { %p5366_p6 = pneg %p5881_p5 }
 0x119   : > { %s5877_s7 = scalar_lea.hbm %s6409_s28, %s4543_s2  ;;  %s5369_s2 = scalar_lea.hbm %s6409_s28, 4096 }
 0x11a   : > { %s5364_s6 = scalar_lea.hbm %s5877_s7, 2048  ;;  %p5370_p10 = scmp.lt.u32.totalorder %s5877_s7, %s6409_s28 }
 0x11b   : > { %p5365_p4 = scmp.ne.s32.totalorder %s5877_s7, %s5364_s6  ;;  %p5371_p7 = scmp.lt.u32.totalorder %s5369_s2, %s5364_s6 }
 0x11c   : > { %p5373_p3 = scmp.lt.u32.totalorder %s5364_s6, %s5877_s7 }
 0x11d   : > { %p5367_p8 = pnand %p5366_p6, %p5365_p4  ;;  %p5372_p1 = por %p5371_p7, %p5370_p10 }
 0x11f   : > { %p5368_p9 = pneg %p5367_p8  ;;  %p5374_p11 = por %p5373_p3, %p5372_p1 }
 0x121   : > { %p5375_p12 = pnand %p5374_p11, %p5368_p9 }
 0x123   : > { %5378 = shalt.err (!%p5375_p12)
}
 0x124   : > { %s5379_s12 = scalar_lea.vmem %s5879_s25, 2048  ;;  %s5465_s29 = smov [#allocation3]  }
 0x125   : > { %p5380_p13 = scmp.ne.s32.totalorder %s5879_s25, %s5379_s12  ;;  %s5384_s22 = sshll.u32 %s5465_s29, 4  ;;  %s5385_s22 = int_to_ptr.vmem [resolvable:$false] %s5384_s22 }
 0x126   : > { %s5386_s1 = scalar_lea.vmem %s5385_s22, 4096  ;;  %p5387_p8 = scmp.lt.s32.totalorder %s5879_s25, %s5385_s22 }
 0x127   : > { %p5382_p2 = pnand %p5380_p13, %p5366_p6  ;;  %p5388_p10 = scmp.lt.s32.totalorder %s5386_s1, %s5379_s12 }
 0x129   : > { %p5383_p4 = pneg %p5382_p2  ;;  %p5389_p7 = por %p5388_p10, %p5387_p8 }
 0x12b   : > { %p5390_p1 = pnand %p5389_p7, %p5383_p4 }
 0x12d   : > { %5393 = shalt.err (!%p5390_p1)
}
 0x12e   : > { %s5466_s6 = smov 1024   ;;  %p6411_p6 = scmp.ne.s32.totalorder %s6392_s24, 0 }
 0x12f   : > { %4747 = dma.hbm_to_vmem [thread:$0]  (!%p5881_p5), %s5877_s7, 2048, %s5879_s25, %s5885_s20, %s5466_s6, %s5466_s6, %s6404_s10  }
 0x130   : > { %728 = sbr.rel (%p6411_p6) target bundleno = 2227 (0x8b3), region = 108  ;;  %s730_s2 = sand.u32 (!%p6411_p6), 1, %s5440_s30  }
 0x131   : > { %s4236_s14 = sshll.u32 (!%p6411_p6), %s730_s2, 7  ;;  %s731_s16 = scalar_lea.sflag (!%p6411_p6), [#allocation4], %s730_s2 }
 0x132   : > { %s5917_s12 = scalar_lea.vmem (!%p6411_p6), [#allocation3], %s4236_s14 }
 0x137   : > { %5411 = dma.done.wait (%p5867_p0), %s731_s16, 2048  }
 0x138   : > { %5413 = vsyncadd (%p5867_p0), %s731_s16, 4294965248  ;;  %p6412_p9 = scmp.ne.s32.totalorder %s6391_s5, 0 }
 0x13a   : > { %5415 = dma.done.wait (%p6412_p9), [#allocation6], 12288  }
 0x13b   : > { %5417 = vsyncadd (%p6412_p9), [#allocation6], 4294955008 }
 0x13c   : > { %5419 = dma.done.wait (%p6412_p9), [#allocation9], 4112  }
 0x13d   : > { %5421 = vsyncadd (%p6412_p9), [#allocation9], 4294963184 }
 0x13e   : > { %5423 = dma.done.wait (%p6412_p9), [#allocation12], 10240  }
 0x13f   : > { %5425 = vsyncadd (%p6412_p9), [#allocation12], 4294957056 }
 0x140   : > { %5427 = dma.done.wait (%p6412_p9), [#allocation15], 6144  }
 0x141   : > { %5429 = vsyncadd (%p6412_p9), [#allocation15], 4294961152 }
 0x142   : > { %5431 = dma.done.wait (%p6412_p9), [#allocation18], 4096  }
 0x143   : > { %5433 = vsyncadd (%p6412_p9), [#allocation18], 4294963200  ;;  %v4816_v1 = vld [vmem:[#allocation5 + $0x40] sm:$0xff]   ;;  %v4820_v5 = vld [vmem:[#allocation5 + $0x48] sm:$0xff]   ;;  %s6413_s10 = sld [smem:[#allocation27_spill]]  ;;  %s6414_s25 = sld [smem:[#allocation29_spill]] }
 0x144   : > { %v4817_v2 = vld [vmem:[#allocation5 + $0xc0] sm:$0xff]   ;;  %4544 = vmatprep.subr.bf16.mxu0 %v4816_v1  ;;  %v4821_v6 = vld [vmem:[#allocation5 + $0xc8] sm:$0xff]   ;;  %v4824_v9 = vld [vmem:[#allocation5 + $0x50] sm:$0xff]   ;;  %s6415_s2 = sld [smem:[#allocation33_spill]]  ;;  %s6419_s29 = sld [smem:[#allocation38_spill]]  ;;  %vm4062_vm0 = vcmask 7168  }
 0x145   : > { %v4818_v3 = vld [vmem:[#allocation5] sm:$0xff]   ;;  %4566 = vmatprep.subr.bf16.mxu1 %v4817_v2  ;;  %v4822_v7 = vld [vmem:[#allocation5 + $0x8] sm:$0xff]   ;;  %v4825_v10 = vld [vmem:[#allocation5 + $0xd0] sm:$0xff]   ;;  %s6420_s6 = sld [smem:[#allocation39_spill]]  ;;  %s6421_s5 = sld [smem:[#allocation40_spill]] }
 0x146   : > { %v4819_v4 = vld [vmem:[#allocation5 + $0x80] sm:$0xff]   ;;  %4545 = vmatpush3.bf16.msra.mxu0 %v4818_v3  ;;  %v4823_v8 = vld [vmem:[#allocation5 + $0x88] sm:$0xff]   ;;  %v4826_v11 = vld [vmem:[#allocation5 + $0x10] sm:$0xff]   ;;  %s6422_s3 = sadd.s32 4294967295, %s5448_s0   ;;  %s6423_s22 = sld [smem:[#allocation41_spill]] }
 0x147   : > { %4567 = vmatpush3.bf16.msra.mxu1 %v4819_v4  ;;  %4546 = vmatprep.subr.bf16.mxu0 %v4820_v5  ;;  %v4827_v12 = vld [vmem:[#allocation5 + $0x90] sm:$0xff]   ;;  %v4828_v13 = vld [vmem:[#allocation5 + $0x58] sm:$0xff]   ;;  %v4832_v17 = vld [vmem:[#allocation5 + $0x60] sm:$0xff]   ;;  %s4246_s7 = sshll.u32 %s6422_s3, 1 }
 0x148   : > { %4568 = vmatprep.subr.bf16.mxu1 %v4821_v6  ;;  %v4829_v14 = vld [vmem:[#allocation5 + $0xd8] sm:$0xff]   ;;  %v4833_v18 = vld [vmem:[#allocation5 + $0xe0] sm:$0xff]   ;;  %v4836_v21 = vld [vmem:[#allocation5 + $0x68] sm:$0xff]   ;;  %p833_p0 = scmp.lt.s32.totalorder %s4246_s7, 3 }
 0x149   : > { %v4830_v15 = vld [vmem:[#allocation5 + $0x18] sm:$0xff]   ;;  %v4834_v19 = vld [vmem:[#allocation5 + $0x20] sm:$0xff]   ;;  %v4837_v22 = vld [vmem:[#allocation5 + $0xe8] sm:$0xff]  }
 0x14a   : > { %4547 = vmatpush3.bf16.msra.mxu0 %v4822_v7  ;;  %v4831_v16 = vld [vmem:[#allocation5 + $0x98] sm:$0xff]   ;;  %v4835_v20 = vld [vmem:[#allocation5 + $0xa0] sm:$0xff]   ;;  %v4838_v23 = vld [vmem:[#allocation5 + $0x28] sm:$0xff]   ;;  %s6429_s7 = smov (!%p833_p0, %s4246_s7), 3 }
 0x14b   : > { %4569 = vmatpush3.bf16.msra.mxu1 %v4823_v8  ;;  %4548 = vmatprep.subr.bf16.mxu0 %v4824_v9  ;;  %v4839_v24 = vld [vmem:[#allocation5 + $0xa8] sm:$0xff]   ;;  %v4840_v25 = vld [vmem:[#allocation5 + $0x70] sm:$0xff]   ;;  %v4844_v29 = vld [vmem:[#allocation5 + $0x78] sm:$0xff]   ;;  %s4247_s11 = sshll.u32 %s6429_s7, 3 }
 0x14c   : > { %4570 = vmatprep.subr.bf16.mxu1 %v4825_v10  ;;  %v4841_v26 = vld [vmem:[#allocation5 + $0xf0] sm:$0xff]   ;;  %v4845_v30 = vld [vmem:[#allocation5 + $0xf8] sm:$0xff]   ;;  %v848_v33 = vld [vmem:[%s5917_s12 + $0x28] sm:$0xff]  ;;  %s836_s1 = scalar_lea.vmem %s6423_s22, %s4247_s11 }
 0x14d   : > { %v4842_v27 = vld [vmem:[#allocation5 + $0x30] sm:$0xff]   ;;  %v4846_v31 = vld [vmem:[#allocation5 + $0x38] sm:$0xff]   ;;  %v852_v34 = vld [vmem:[%s5917_s12 + $0x68] sm:$0xff] }
 0x14e   : > { %4549 = vmatpush3.bf16.msra.mxu0 %v4826_v11  ;;  %v4843_v28 = vld [vmem:[#allocation5 + $0xb0] sm:$0xff]   ;;  %v4847_v32 = vld [vmem:[#allocation5 + $0xb8] sm:$0xff]   ;;  %v856_v36 = vpack.c.bf16 %v852_v34, %v848_v33  ;;  %v847_v38 = vld [vmem:[%s5917_s12 + $0x20] sm:$0xff] }
 0x14f   : > { %4571 = vmatpush3.bf16.msra.mxu1 %v4827_v12  ;;  %4550 = vmatprep.subr.bf16.mxu0 %v4828_v13  ;;  %v850_v35 = vld [vmem:[%s5917_s12 + $0x38] sm:$0xff]  ;;  %v851_v39 = vld [vmem:[%s5917_s12 + $0x60] sm:$0xff]  ;;  %v849_v42 = vld [vmem:[%s5917_s12 + $0x30] sm:$0xff] }
 0x150   : > { %4572 = vmatprep.subr.bf16.mxu1 %v4829_v14  ;;  %v854_v37 = vld [vmem:[%s5917_s12 + $0x78] sm:$0xff]  ;;  %v855_v41 = vpack.c.bf16 %v851_v39, %v847_v38  ;;  %v853_v43 = vld [vmem:[%s5917_s12 + $0x70] sm:$0xff]  ;;  %v1207_v44 = vld [vmem:[#allocation7] sm:$0xff]  ;;  %1154 = vmatprep.mubr.bf16.mxu0 %v856_v36 }
 0x151   : > { %v858_v40 = vpack.c.bf16 %v854_v37, %v850_v35  ;;  %v857_v45 = vpack.c.bf16 %v853_v43, %v849_v42  ;;  %v1211_v46 = vld [vmem:[#allocation7 + $0x20] sm:$0xff]  ;;  %v1208_v47 = vld [vmem:[#allocation7 + $0x8] sm:$0xff] }
 0x152   : > { %4551 = vmatpush3.bf16.msra.mxu0 %v4830_v15  ;;  %v1212_v48 = vld [vmem:[#allocation7 + $0x28] sm:$0xff]  ;;  %v4281_v49 = vcombine.low %v1207_v44, %v1211_v46  ;;  %v4282_v50 = vcombine.high %v1207_v44, %v1211_v46  ;;  %v1215_v52 = vld [vmem:[#allocation7 + $0x40] sm:$0xff]  ;;  %v1213_v46 = vld [vmem:[#allocation7 + $0x30] sm:$0xff] }
 0x153   : > { %4573 = vmatpush3.bf16.msra.mxu1 %v4831_v16  ;;  %4552 = vmatprep.subr.bf16.mxu0 %v4832_v17  ;;  %v4283_v51 = vcombine.low %v1208_v47, %v1212_v48  ;;  %v1219_v53 = vld [vmem:[#allocation7 + $0x60] sm:$0xff]  ;;  %v1216_v54 = vld [vmem:[#allocation7 + $0x48] sm:$0xff]  ;;  %v4284_v55 = vcombine.high %v1208_v47, %v1212_v48  ;;  %v1210_v47 = vld [vmem:[#allocation7 + $0x18] sm:$0xff] }
 0x154   : > { %4574 = vmatprep.subr.bf16.mxu1 %v4833_v18  ;;  %1195 = vmatprep.mubr.bf16.mxu1 %v858_v40  ;;  %v4290_v56 = vcombine.high %v1215_v52, %v1219_v53  ;;  %v1220_v57 = vld [vmem:[#allocation7 + $0x68] sm:$0xff]  ;;  %v1223_v58 = vld [vmem:[#allocation7 + $0x80] sm:$0xff]  ;;  %v4289_v63 = vcombine.low %v1215_v52, %v1219_v53 }
 0x155   : > { %v1227_v59 = vld [vmem:[#allocation7 + $0xa0] sm:$0xff]  ;;  %v4292_v60 = vcombine.high %v1216_v54, %v1220_v57  ;;  %v1224_v61 = vld [vmem:[#allocation7 + $0x88] sm:$0xff]  ;;  %v4291_v0 = vcombine.low %v1216_v54, %v1220_v57 }
 0x156   : > { %4553 = vmatpush3.bf16.msra.mxu0 %v4834_v19  ;;  %v1228_v62 = vld [vmem:[#allocation7 + $0xa8] sm:$0xff]  ;;  %v4298_v1 = vcombine.high %v1223_v58, %v1227_v59  ;;  %v1231_v2 = vld [vmem:[#allocation7 + $0xc0] sm:$0xff]  ;;  %v4297_v7 = vcombine.low %v1223_v58, %v1227_v59 }
 0x157   : > { %4575 = vmatpush3.bf16.msra.mxu1 %v4835_v20  ;;  %4554 = vmatprep.subr.bf16.mxu0 %v4836_v21  ;;  %v1235_v3 = vld [vmem:[#allocation7 + $0xe0] sm:$0xff]  ;;  %v1232_v4 = vld [vmem:[#allocation7 + $0xc8] sm:$0xff]  ;;  %v4300_v5 = vcombine.high %v1224_v61, %v1228_v62  ;;  %v4299_v10 = vcombine.low %v1224_v61, %v1228_v62 }
 0x158   : > { %4576 = vmatprep.subr.bf16.mxu1 %v4837_v22  ;;  %v1236_v6 = vld [vmem:[#allocation7 + $0xe8] sm:$0xff]  ;;  %v1239_v8 = vld [vmem:[#allocation7 + $0x100] sm:$0xff]  ;;  %v4306_v11 = vcombine.high %v1231_v2, %v1235_v3  ;;  %v4305_v15 = vcombine.low %v1231_v2, %v1235_v3 }
 0x159   : > { %v1243_v9 = vld [vmem:[#allocation7 + $0x120] sm:$0xff]  ;;  %v1240_v12 = vld [vmem:[#allocation7 + $0x108] sm:$0xff]  ;;  %v4308_v14 = vcombine.high %v1232_v4, %v1236_v6  ;;  %v4307_v16 = vcombine.low %v1232_v4, %v1236_v6 }
 0x15a   : > { %4555 = vmatpush3.bf16.msra.mxu0 %v4838_v23  ;;  %v1244_v13 = vld [vmem:[#allocation7 + $0x128] sm:$0xff]  ;;  %v4314_v17 = vcombine.high %v1239_v8, %v1243_v9  ;;  %v4313_v19 = vcombine.low %v1239_v8, %v1243_v9  ;;  %v1247_v21 = vld [vmem:[#allocation7 + $0x140] sm:$0xff]  ;;  %v1221_v8 = vld [vmem:[#allocation7 + $0x70] sm:$0xff] }
 0x15b   : > { %4577 = vmatpush3.bf16.msra.mxu1 %v4839_v24  ;;  %4556 = vmatprep.subr.bf16.mxu0 %v4840_v25  ;;  %v4316_v18 = vcombine.high %v1240_v12, %v1244_v13  ;;  %v4315_v20 = vcombine.low %v1240_v12, %v1244_v13  ;;  %v1251_v22 = vld [vmem:[#allocation7 + $0x160] sm:$0xff]  ;;  %v1248_v23 = vld [vmem:[#allocation7 + $0x148] sm:$0xff]  ;;  %v1218_v9 = vld [vmem:[#allocation7 + $0x58] sm:$0xff] }
 0x15c   : > { %4578 = vmatprep.subr.bf16.mxu1 %v4841_v26  ;;  %v4322_v24 = vcombine.high %v1247_v21, %v1251_v22  ;;  %v1252_v25 = vld [vmem:[#allocation7 + $0x168] sm:$0xff]  ;;  %v4321_v26 = vcombine.low %v1247_v21, %v1251_v22  ;;  %v1263_v37 = vld [vmem:[#allocation7 + $0x1c0] sm:$0xff] }
 0x15d   : > { %v1260_v33 = vld [vmem:[#allocation7 + $0x1a8] sm:$0xff]  ;;  %v1267_v38 = vld [vmem:[#allocation7 + $0x1e0] sm:$0xff] }
 0x15e   : > { %4557 = vmatpush3.bf16.msra.mxu0 %v4842_v27  ;;  %v4323_v27 = vcombine.low %v1248_v23, %v1252_v25  ;;  %v1264_v39 = vld [vmem:[#allocation7 + $0x1c8] sm:$0xff]  ;;  %v4338_v40 = vcombine.high %v1263_v37, %v1267_v38  ;;  %v4337_v42 = vcombine.low %v1263_v37, %v1267_v38 }
 0x15f   : > { %4579 = vmatpush3.bf16.msra.mxu1 %v4843_v28  ;;  %4558 = vmatprep.subr.bf16.mxu0 %v4844_v29  ;;  %v4324_v28 = vcombine.high %v1248_v23, %v1252_v25  ;;  %v1255_v29 = vld [vmem:[#allocation7 + $0x180] sm:$0xff]  ;;  %v1237_v25 = vld [vmem:[#allocation7 + $0xf0] sm:$0xff] }
 0x160   : > { %4580 = vmatprep.subr.bf16.mxu1 %v4845_v30  ;;  %v1259_v30 = vld [vmem:[#allocation7 + $0x1a0] sm:$0xff] }
 0x161   : > { %v4329_v34 = vcombine.low %v1255_v29, %v1259_v30 }
 0x162   : > { %4559 = vmatpush3.bf16.msra.mxu0 %v4846_v31  ;;  %v1256_v31 = vld [vmem:[#allocation7 + $0x188] sm:$0xff] }
 0x163   : > { %4581 = vmatpush3.bf16.msra.mxu1 %v4847_v32  ;;  %1633 = vmatprep.subr.bf16.mxu0 %v4282_v50  ;;  %v4330_v32 = vcombine.high %v1255_v29, %v1259_v30  ;;  %v4331_v35 = vcombine.low %v1256_v31, %v1260_v33  ;;  %v4332_v36 = vcombine.high %v1256_v31, %v1260_v33  ;;  %v1214_v50 = vld [vmem:[#allocation7 + $0x38] sm:$0xff]  ;;  %v1245_v33 = vld [vmem:[#allocation7 + $0x130] sm:$0xff] }
 0x164   : > { %1676 = vmatprep.subr.bf16.mxu1 %v4284_v55  ;;  %v4287_v52 = vcombine.low %v1210_v47, %v1214_v50  ;;  %v4288_v53 = vcombine.high %v1210_v47, %v1214_v50  ;;  %v1258_v50 = vld [vmem:[#allocation7 + $0x198] sm:$0xff] }
 0x165   : > { %1155 = vmatmul.mubr.bf16.vlgmr.msra.gmra.mrb[0].mxu0 %v855_v41  ;;  %v1268_v41 = vld [vmem:[#allocation7 + $0x1e8] sm:$0xff] }
 0x166   : > { %1196 = vmatmul.mubr.bf16.vlgmr.msra.gmra.mrb[0].mxu1 %v857_v45  ;;  %1634 = vmatpush1.bf16.msra.mxu0 %v4281_v49  ;;  %v4339_v43 = vcombine.low %v1264_v39, %v1268_v41  ;;  %v4340_v44 = vcombine.high %v1264_v39, %v1268_v41  ;;  %v1209_v45 = vld [vmem:[#allocation7 + $0x10] sm:$0xff] }
 0x167   : > { %1677 = vmatpush1.bf16.msra.mxu1 %v4283_v51  ;;  %1635 = vmatprep.subr.bf16.mxu0 %v4290_v56  ;;  %v4285_v48 = vcombine.low %v1209_v45, %v1213_v46  ;;  %v4286_v49 = vcombine.high %v1209_v45, %v1213_v46  ;;  %v5467_v51 = vmov 0   ;;  %v4248_v56 = vld [vmem:[%s6413_s10] ss:$0 sm:$0xff]  ;;  %v1253_v41 = vld [vmem:[#allocation7 + $0x170] sm:$0xff]  ;;  %s6417_s10 = sld [smem:[#allocation36_spill]] }
 0x168   : > { %1678 = vmatprep.subr.bf16.mxu1 %v4292_v60  ;;  %1665 = vmatprep.mubr.bf16.mxu0 %v5467_v51 }
 0x169   : > { %1708 = vmatprep.mubr.bf16.mxu1 %v5467_v51 }
 0x16a   : > { %1636 = vmatpush1.bf16.msra.mxu0 %v4289_v63 }
 0x16b   : > { %1679 = vmatpush1.bf16.msra.mxu1 %v4291_v0  ;;  %1637 = vmatprep.subr.bf16.mxu0 %v4298_v1 }
 0x16c   : > { %1680 = vmatprep.subr.bf16.mxu1 %v4300_v5 }
 0x16e   : > { %1638 = vmatpush1.bf16.msra.mxu0 %v4297_v7  ;;  %v1217_v7 = vld [vmem:[#allocation7 + $0x50] sm:$0xff] }
 0x16f   : > { %1681 = vmatpush1.bf16.msra.mxu1 %v4299_v10  ;;  %1639 = vmatprep.subr.bf16.mxu0 %v4306_v11  ;;  %v1222_v10 = vld [vmem:[#allocation7 + $0x78] sm:$0xff] }
 0x170   : > { %1682 = vmatprep.subr.bf16.mxu1 %v4308_v14  ;;  %v4294_v14 = vcombine.high %v1217_v7, %v1221_v8  ;;  %v4295_v21 = vcombine.low %v1218_v9, %v1222_v10 }
 0x172   : > { %1640 = vmatpush1.bf16.msra.mxu0 %v4305_v15  ;;  %v4296_v15 = vcombine.high %v1218_v9, %v1222_v10  ;;  %v4854_v9 = vld [vmem:[#allocation8 + $0x8] sm:$0xff]  }
 0x173   : > { %1683 = vmatpush1.bf16.msra.mxu1 %v4307_v16  ;;  %1641 = vmatprep.subr.bf16.mxu0 %v4314_v17  ;;  %v1225_v16 = vld [vmem:[#allocation7 + $0x90] sm:$0xff]  ;;  %v4855_v10 = vld [vmem:[#allocation8 + $0x88] sm:$0xff]  }
 0x174   : > { %1684 = vmatprep.subr.bf16.mxu1 %v4316_v18  ;;  %v1229_v17 = vld [vmem:[#allocation7 + $0xb0] sm:$0xff]  ;;  %v1226_v18 = vld [vmem:[#allocation7 + $0x98] sm:$0xff] }
 0x175   : > { %v4302_v22 = vcombine.high %v1225_v16, %v1229_v17 }
 0x176   : > { %1642 = vmatpush1.bf16.msra.mxu0 %v4313_v19  ;;  %v1230_v19 = vld [vmem:[#allocation7 + $0xb8] sm:$0xff] }
 0x177   : > { %1685 = vmatpush1.bf16.msra.mxu1 %v4315_v20  ;;  %1643 = vmatprep.subr.bf16.mxu0 %v4322_v24  ;;  %v4293_v20 = vcombine.low %v1217_v7, %v1221_v8  ;;  %v4304_v23 = vcombine.high %v1226_v18, %v1230_v19  ;;  %v1233_v24 = vld [vmem:[#allocation7 + $0xd0] sm:$0xff]  ;;  %v4303_v29 = vcombine.low %v1226_v18, %v1230_v19  ;;  %v4852_v7 = vld [vmem:[#allocation8 + $0x48] sm:$0xff]   ;;  %v4863_v18 = vld [vmem:[#allocation8 + $0x98] sm:$0xff]  }
 0x178   : > { %1686 = vmatprep.subr.bf16.mxu1 %v4324_v28  ;;  %v4301_v28 = vcombine.low %v1225_v16, %v1229_v17  ;;  %v4310_v30 = vcombine.high %v1233_v24, %v1237_v25  ;;  %v4853_v8 = vld [vmem:[#allocation8 + $0xc8] sm:$0xff]   ;;  %v4861_v16 = vld [vmem:[#allocation8 + $0xd8] sm:$0xff]   ;;  %v4864_v19 = vld [vmem:[#allocation8 + $0x60] sm:$0xff]  }
 0x179   : > { %v4862_v17 = vld [vmem:[#allocation8 + $0x18] sm:$0xff]  }
 0x17a   : > { %1644 = vmatpush1.bf16.msra.mxu0 %v4321_v26  ;;  %v1234_v26 = vld [vmem:[#allocation7 + $0xd8] sm:$0xff] }
 0x17b   : > { %1687 = vmatpush1.bf16.msra.mxu1 %v4323_v27  ;;  %1645 = vmatprep.subr.bf16.mxu0 %v4330_v32  ;;  %v1238_v27 = vld [vmem:[#allocation7 + $0xf8] sm:$0xff]  ;;  %v1241_v32 = vld [vmem:[#allocation7 + $0x110] sm:$0xff] }
 0x17c   : > { %1688 = vmatprep.subr.bf16.mxu1 %v4332_v36  ;;  %v4312_v31 = vcombine.high %v1234_v26, %v1238_v27  ;;  %v4309_v36 = vcombine.low %v1233_v24, %v1237_v25  ;;  %v4311_v37 = vcombine.low %v1234_v26, %v1238_v27  ;;  %v4318_v38 = vcombine.high %v1241_v32, %v1245_v33  ;;  %v4869_v24 = vld [vmem:[#allocation8 + $0xe8] sm:$0xff]   ;;  %v4872_v27 = vld [vmem:[#allocation8 + $0x70] sm:$0xff]  }
 0x17d   : > { %v4870_v25 = vld [vmem:[#allocation8 + $0x28] sm:$0xff]  }
 0x17e   : > { %1646 = vmatpush1.bf16.msra.mxu0 %v4329_v34  ;;  %v1242_v34 = vld [vmem:[#allocation7 + $0x118] sm:$0xff]  ;;  %v4871_v26 = vld [vmem:[#allocation8 + $0xa8] sm:$0xff]  }
 0x17f   : > { %1689 = vmatpush1.bf16.msra.mxu1 %v4331_v35  ;;  %1647 = vmatprep.subr.bf16.mxu0 %v4338_v40  ;;  %v1246_v35 = vld [vmem:[#allocation7 + $0x138] sm:$0xff]  ;;  %v1249_v40 = vld [vmem:[#allocation7 + $0x150] sm:$0xff] }
 0x180   : > { %1690 = vmatprep.subr.bf16.mxu1 %v4340_v44  ;;  %v4320_v39 = vcombine.high %v1242_v34, %v1246_v35  ;;  %v4317_v44 = vcombine.low %v1241_v32, %v1245_v33  ;;  %v4319_v45 = vcombine.low %v1242_v34, %v1246_v35  ;;  %v4326_v46 = vcombine.high %v1249_v40, %v1253_v41  ;;  %v4877_v32 = vld [vmem:[#allocation8 + $0xf8] sm:$0xff]   ;;  %v5964_v35 = vld [vmem:[#allocation11] sm:$0xff] }
 0x181   : > { %v4878_v33 = vld [vmem:[#allocation8 + $0x38] sm:$0xff]  }
 0x182   : > { %1648 = vmatpush1.bf16.msra.mxu0 %v4337_v42  ;;  %v1250_v42 = vld [vmem:[#allocation7 + $0x158] sm:$0xff] }
 0x183   : > { %1691 = vmatpush1.bf16.msra.mxu1 %v4339_v43  ;;  %1719 = vmatprep.subr.bf16.mxu0 %v4286_v49  ;;  %v1254_v43 = vld [vmem:[#allocation7 + $0x178] sm:$0xff]  ;;  %v1261_v49 = vld [vmem:[#allocation7 + $0x1b0] sm:$0xff] }
 0x184   : > { %1762 = vmatprep.subr.bf16.mxu1 %v4288_v53  ;;  %v4328_v47 = vcombine.high %v1250_v42, %v1254_v43  ;;  %v4325_v53 = vcombine.low %v1249_v40, %v1253_v41  ;;  %v4879_v34 = vld [vmem:[#allocation8 + $0xb8] sm:$0xff]   ;;  %v5974_v40 = vld [vmem:[#allocation11 + $0x28] sm:$0xff] }
 0x238   : > { %v4560_v54 = vpop.f32.mrb[0].mxu0 }
 0x239   : > { %v4582_v55 = vpop.f32.mrb[0].mxu1  ;;  %v4561_v57 = vpop.f32.mrb[1].mxu0 }
 0x23a   : > { %v4562_v58 = vadd.f32 %v4561_v57, %v4560_v54  ;;  %v4583_v59 = vpop.f32.mrb[1].mxu1  ;;  %v4563_v60 = vpop.f32.mrb[2].mxu0  ;;  %v4327_v54 = vcombine.low %v1250_v42, %v1254_v43  ;;  %v1265_v57 = vld [vmem:[#allocation7 + $0x1d0] sm:$0xff]  ;;  %v1273_v43 = vlaneseq }
 0x23b   : > { %v4584_v61 = vadd.f32 %v4583_v59, %v4582_v55  ;;  %v4585_v62 = vpop.f32.mrb[2].mxu1  ;;  %v4564_v63 = vpop.f32.mrb[3].mxu0  ;;  %v1266_v59 = vld [vmem:[#allocation7 + $0x1d8] sm:$0xff] }
 0x23c   : > { %v1157_v0 = vadd.f32 %v4562_v58, %v4248_v56  ;;  %v4565_v1 = vadd.f32 %v4564_v63, %v4563_v60  ;;  %v4586_v2 = vpop.f32.mrb[3].mxu1  ;;  %v1269_v58 = vld [vmem:[#allocation7 + $0x1f0] sm:$0xff]  ;;  %v1270_v60 = vld [vmem:[#allocation7 + $0x1f8] sm:$0xff] }
 0x23d   : > { %v4587_v3 = vadd.f32 %v4586_v2, %v4585_v62  ;;  %v4342_v63 = vcombine.high %v1265_v57, %v1269_v58  ;;  %v4343_v2 = vcombine.low %v1266_v59, %v1270_v60 }
 0x23e   : > { %v1198_v4 = vadd.f32 %v4584_v61, %v1157_v0  ;;  %v1160_v5 = vadd.f32 %v4565_v1, %v4248_v56  ;;  %v4344_v0 = vcombine.high %v1266_v59, %v1270_v60  ;;  %v4341_v1 = vcombine.low %v1265_v57, %v1269_v58 }
 0x240   : > { %v1201_v6 = vadd.f32 %v4587_v3, %v1160_v5  ;;  %v1204_v11 = vmax.f32 %v1198_v4, 0.0  ;;  %v4848_v3 = vld [vmem:[#allocation8 + $0x40] sm:$0xff]  }
 0x241   : > { %v4849_v4 = vld [vmem:[#allocation8 + $0xc0] sm:$0xff]  }
 0x242   : > { %v1205_v12 = vmax.f32 %v1201_v6, 0.0  ;;  %v4850_v5 = vld [vmem:[#allocation8] sm:$0xff]  }
 0x243   : > { %v4851_v6 = vld [vmem:[#allocation8 + $0x80] sm:$0xff]  }
 0x244   : > { %v5956_v13 = vpack.c.bf16 %v1205_v12, %v1204_v11  ;;  %v4856_v11 = vld [vmem:[#allocation8 + $0x50] sm:$0xff]  }
 0x245   : > { %v4857_v12 = vld [vmem:[#allocation8 + $0xd0] sm:$0xff]  }
 0x246   : > { %1666 = vmatmul.mubr.bf16.vlgmr.msra.gmra.mrb[4].mxu0 %v5956_v13  ;;  %1709 = vmatmul.mubr.bf16.vlgmr.msra.gmra.mrb[4].mxu1 %v5956_v13 }
 0x247   : > { %1720 = vmatpush1.bf16.msra.mxu0 %v4285_v48  ;;  %1763 = vmatpush1.bf16.msra.mxu1 %v4287_v52  ;;  %v1257_v48 = vld [vmem:[#allocation7 + $0x190] sm:$0xff]  ;;  %v1262_v52 = vld [vmem:[#allocation7 + $0x1b8] sm:$0xff] }
 0x248   : > { %1721 = vmatprep.subr.bf16.mxu0 %v4294_v14  ;;  %1764 = vmatprep.subr.bf16.mxu1 %v4296_v15  ;;  %v4334_v55 = vcombine.high %v1257_v48, %v1261_v49  ;;  %v4336_v56 = vcombine.high %v1258_v50, %v1262_v52  ;;  %v4333_v61 = vcombine.low %v1257_v48, %v1261_v49  ;;  %v4858_v14 = vld [vmem:[#allocation8 + $0x10] sm:$0xff]   ;;  %v4860_v15 = vld [vmem:[#allocation8 + $0x58] sm:$0xff]  }
 0x249   : > { %1751 = vmatprep.mubr.bf16.mxu0 %v5467_v51  ;;  %1794 = vmatprep.mubr.bf16.mxu1 %v5467_v51  ;;  %v4335_v62 = vcombine.low %v1258_v50, %v1262_v52 }
 0x24b   : > { %1722 = vmatpush1.bf16.msra.mxu0 %v4293_v20  ;;  %1765 = vmatpush1.bf16.msra.mxu1 %v4295_v21  ;;  %v4865_v20 = vld [vmem:[#allocation8 + $0xe0] sm:$0xff]  }
 0x24c   : > { %1723 = vmatprep.subr.bf16.mxu0 %v4302_v22  ;;  %1766 = vmatprep.subr.bf16.mxu1 %v4304_v23  ;;  %v4866_v21 = vld [vmem:[#allocation8 + $0x20] sm:$0xff]   ;;  %v4868_v23 = vld [vmem:[#allocation8 + $0x68] sm:$0xff]  }
 0x24d   : > { %v4867_v22 = vld [vmem:[#allocation8 + $0xa0] sm:$0xff]  }
 0x24f   : > { %1724 = vmatpush1.bf16.msra.mxu0 %v4301_v28  ;;  %1767 = vmatpush1.bf16.msra.mxu1 %v4303_v29  ;;  %v4873_v28 = vld [vmem:[#allocation8 + $0xf0] sm:$0xff]  }
 0x250   : > { %1725 = vmatprep.subr.bf16.mxu0 %v4310_v30  ;;  %1768 = vmatprep.subr.bf16.mxu1 %v4312_v31  ;;  %v4874_v29 = vld [vmem:[#allocation8 + $0x30] sm:$0xff]   ;;  %v4876_v31 = vld [vmem:[#allocation8 + $0x78] sm:$0xff]  }
 0x251   : > { %v4875_v30 = vld [vmem:[#allocation8 + $0xb0] sm:$0xff]  }
 0x253   : > { %1726 = vmatpush1.bf16.msra.mxu0 %v4309_v36  ;;  %1769 = vmatpush1.bf16.msra.mxu1 %v4311_v37  ;;  %v5966_v36 = vld [vmem:[#allocation11 + $0x20] sm:$0xff]  ;;  %v5968_v37 = vld [vmem:[#allocation11 + $0x8] sm:$0xff] }
 0x254   : > { %1727 = vmatprep.subr.bf16.mxu0 %v4318_v38  ;;  %1770 = vmatprep.subr.bf16.mxu1 %v4320_v39  ;;  %v4378_v38 = vcombine.low %v5964_v35, %v5966_v36  ;;  %v4379_v39 = vcombine.high %v5964_v35, %v5966_v36  ;;  %v4380_v41 = vcombine.low %v5968_v37, %v5974_v40 }
 0x255   : > { %v4381_v42 = vcombine.high %v5968_v37, %v5974_v40  ;;  %v2237_v40 = vld [vmem:[#allocation11 + $0x100] sm:$0xff] }
 0x257   : > { %1728 = vmatpush1.bf16.msra.mxu0 %v4317_v44  ;;  %1771 = vmatpush1.bf16.msra.mxu1 %v4319_v45  ;;  %v5980_v44 = vshrl.u32 %v1273_v43, 7 }
 0x258   : > { %1729 = vmatprep.subr.bf16.mxu0 %v4326_v46  ;;  %1772 = vmatprep.subr.bf16.mxu1 %v4328_v47  ;;  %v5991_v47 = vld [vmem:[%s6414_s25] sm:$0xff]  ;;  %s6418_s25 = sld [smem:[#allocation37_spill]] }
 0x259   : > { %v5983_v45 = vsub.s32 0, %v5980_v44  ;;  %v5986_v46 = vsub.s32 2, %v5980_v44  ;;  %v5994_v48 = vsub.s32 1, %v5980_v44  ;;  %v5997_v49 = vsub.s32 3, %v5980_v44 }
 0x25b   : > { %1730 = vmatpush1.bf16.msra.mxu0 %v4325_v53  ;;  %1773 = vmatpush1.bf16.msra.mxu1 %v4327_v54  ;;  %v1276_v50 = vrot.slane %v5991_v47, %v5983_v45  ;;  %v1284_v52 = vrot.slane %v5991_v47, %v5986_v46  ;;  %v1280_v53 = vrot.slane %v5991_v47, %v5994_v48 }
 0x25c   : > { %1731 = vmatprep.subr.bf16.mxu0 %v4334_v55  ;;  %1774 = vmatprep.subr.bf16.mxu1 %v4336_v56  ;;  %v1288_v54 = vrot.slane %v5991_v47, %v5997_v49 }
 0x25f   : > { %1732 = vmatpush1.bf16.msra.mxu0 %v4333_v61  ;;  %1775 = vmatpush1.bf16.msra.mxu1 %v4335_v62 }
 0x260   : > { %1733 = vmatprep.subr.bf16.mxu0 %v4342_v63  ;;  %1776 = vmatprep.subr.bf16.mxu1 %v4344_v0 }
 0x263   : > { %1734 = vmatpush1.bf16.msra.mxu0 %v4341_v1  ;;  %1777 = vmatpush1.bf16.msra.mxu1 %v4343_v2 }
 0x264   : > { %4588 = vmatprep.subr.bf16.mxu0 %v4848_v3  ;;  %4610 = vmatprep.subr.bf16.mxu1 %v4849_v4 }
 0x266   : > { %1752 = vmatmul.mubr.bf16.vlgmr.msra.gmra.mrb[8].mxu0 %v5956_v13  ;;  %1795 = vmatmul.mubr.bf16.vlgmr.msra.gmra.mrb[8].mxu1 %v5956_v13  ;;  %v4859_v13 = vld [vmem:[#allocation8 + $0x90] sm:$0xff]  }
 0x267   : > { %4589 = vmatpush3.bf16.msra.mxu0 %v4850_v5  ;;  %4611 = vmatpush3.bf16.msra.mxu1 %v4851_v6 }
 0x268   : > { %4590 = vmatprep.subr.bf16.mxu0 %v4852_v7  ;;  %4612 = vmatprep.subr.bf16.mxu1 %v4853_v8 }
 0x26b   : > { %4591 = vmatpush3.bf16.msra.mxu0 %v4854_v9  ;;  %4613 = vmatpush3.bf16.msra.mxu1 %v4855_v10 }
 0x26c   : > { %4592 = vmatprep.subr.bf16.mxu0 %v4856_v11  ;;  %4614 = vmatprep.subr.bf16.mxu1 %v4857_v12 }
 0x26f   : > { %4593 = vmatpush3.bf16.msra.mxu0 %v4858_v14  ;;  %4615 = vmatpush3.bf16.msra.mxu1 %v4859_v13 }
 0x270   : > { %4594 = vmatprep.subr.bf16.mxu0 %v4860_v15  ;;  %4616 = vmatprep.subr.bf16.mxu1 %v4861_v16 }
 0x273   : > { %4595 = vmatpush3.bf16.msra.mxu0 %v4862_v17  ;;  %4617 = vmatpush3.bf16.msra.mxu1 %v4863_v18 }
 0x274   : > { %4596 = vmatprep.subr.bf16.mxu0 %v4864_v19  ;;  %4618 = vmatprep.subr.bf16.mxu1 %v4865_v20 }
 0x277   : > { %4597 = vmatpush3.bf16.msra.mxu0 %v4866_v21  ;;  %4619 = vmatpush3.bf16.msra.mxu1 %v4867_v22 }
 0x278   : > { %4598 = vmatprep.subr.bf16.mxu0 %v4868_v23  ;;  %4620 = vmatprep.subr.bf16.mxu1 %v4869_v24 }
 0x27b   : > { %4599 = vmatpush3.bf16.msra.mxu0 %v4870_v25  ;;  %4621 = vmatpush3.bf16.msra.mxu1 %v4871_v26 }
 0x27c   : > { %4600 = vmatprep.subr.bf16.mxu0 %v4872_v27  ;;  %4622 = vmatprep.subr.bf16.mxu1 %v4873_v28 }
 0x27f   : > { %4601 = vmatpush3.bf16.msra.mxu0 %v4874_v29  ;;  %4623 = vmatpush3.bf16.msra.mxu1 %v4875_v30  ;;  %v1291_v30 = vsub.s32 4, %v5980_v44 }
 0x280   : > { %4602 = vmatprep.subr.bf16.mxu0 %v4876_v31  ;;  %4624 = vmatprep.subr.bf16.mxu1 %v4877_v32  ;;  %v1299_v31 = vsub.s32 6, %v5980_v44 }
 0x283   : > { %4603 = vmatpush3.bf16.msra.mxu0 %v4878_v33  ;;  %4625 = vmatpush3.bf16.msra.mxu1 %v4879_v34  ;;  %v1295_v33 = vsub.s32 5, %v5980_v44  ;;  %v1303_v34 = vsub.s32 7, %v5980_v44 }
 0x284   : > { %2631 = vmatprep.subr.bf16.mxu0 %v4379_v39  ;;  %2674 = vmatprep.subr.bf16.mxu1 %v4381_v42  ;;  %v1292_v39 = vrot.slane %v5991_v47, %v1291_v30  ;;  %v1300_v42 = vrot.slane %v5991_v47, %v1299_v31 }
 0x285   : > { %v1296_v43 = vrot.slane %v5991_v47, %v1295_v33 }
 0x319   : > { %v1667_v55 = vpop.f32.mrb[4].mxu0  ;;  %v1710_v56 = vpop.f32.mrb[4].mxu1 }
 0x31a   : > { %v1668_v57 = vadd.f32 %v1667_v55, %v1276_v50  ;;  %v1711_v58 = vadd.f32 %v1710_v56, %v1284_v52  ;;  %v1669_v59 = vpop.f32.mrb[5].mxu0  ;;  %v1712_v60 = vpop.f32.mrb[5].mxu1  ;;  %v839_v55 = vld [vmem:[%s5917_s12] sm:$0xff] }
 0x31b   : > { %v1670_v61 = vadd.f32 %v1669_v59, %v1280_v53  ;;  %v1713_v62 = vadd.f32 %v1712_v60, %v1288_v54  ;;  %v1671_v63 = vpop.f32.mrb[6].mxu0  ;;  %v1714_v0 = vpop.f32.mrb[6].mxu1  ;;  %v842_v60 = vld [vmem:[%s5917_s12 + $0x18] sm:$0xff] }
 0x31c   : > { %5008 = vtanh.f32 %v1668_v57  ;;  %v1672_v1 = vadd.f32 %v1671_v63, %v1276_v50  ;;  %v1673_v2 = vpop.f32.mrb[7].mxu0  ;;  %v1716_v3 = vpop.f32.mrb[7].mxu1  ;;  %v1715_v4 = vadd.f32 %v1714_v0, %v1284_v52  ;;  %v1304_v50 = vrot.slane %v5991_v47, %v1303_v34  ;;  %v841_v63 = vld [vmem:[%s5917_s12 + $0x10] sm:$0xff] }
 0x31d   : > { %5010 = vtanh.f32 %v1711_v58  ;;  %v1674_v5 = vadd.f32 %v1673_v2, %v1280_v53  ;;  %v1717_v6 = vadd.f32 %v1716_v3, %v1288_v54  ;;  %v840_v58 = vld [vmem:[%s5917_s12 + $0x8] sm:$0xff]  ;;  %v843_v2 = vld [vmem:[%s5917_s12 + $0x40] sm:$0xff]  ;;  %v845_v47 = vld [vmem:[%s5917_s12 + $0x50] sm:$0xff] }
 0x31e   : > { %5012 = vtanh.f32 %v1670_v61 }
 0x31f   : > { %5014 = vtanh.f32 %v1713_v62 }
 0x320   : > { %5016 = vtanh.f32 %v1672_v1 }
 0x321   : > { %5018 = vtanh.f32 %v1715_v4 }
 0x322   : > { %5020 = vtanh.f32 %v1674_v5 }
 0x323   : > { %5022 = vtanh.f32 %v1717_v6 }
 0x326   : > { %v6007_v7 = vpop.eup %5008 }
 0x327   : > { %v6009_v8 = vpop.eup %5010  ;;  %v1821_v10 = vsub.f32 0.0, %v6007_v7 }
 0x328   : > { %v6011_v9 = vpop.eup %5012  ;;  %v1823_v25 = vsub.f32 0.0, %v6009_v8 }
 0x329   : > { %v6014_v11 = vpop.eup %5014  ;;  %v1822_v12 = vsub.f32 0.0, %v6011_v9  ;;  %v1829_v18 = vmul.f32 1.442695, %v1821_v10 }
 0x32a   : > { %v6017_v14 = vpop.eup %5016  ;;  %v1824_v13 = vsub.f32 0.0, %v6014_v11  ;;  %v1833_v32 = vmul.f32 1.442695, %v1823_v25 }
 0x32b   : > { %v6020_v15 = vpop.eup %5018  ;;  %v1825_v16 = vsub.f32 0.0, %v6017_v14  ;;  %v1831_v21 = vmul.f32 1.442695, %v1822_v12  ;;  %5024 = vpow2.f32 %v1829_v18  ;;  %v844_v12 = vld [vmem:[%s5917_s12 + $0x48] sm:$0xff] }
 0x32c   : > { %v6023_v17 = vpop.eup %5020  ;;  %v1827_v19 = vsub.f32 0.0, %v6020_v15  ;;  %v1835_v23 = vmul.f32 1.442695, %v1824_v13 }
 0x32d   : > { %v6026_v20 = vpop.eup %5022  ;;  %v1826_v22 = vsub.f32 0.0, %v6023_v17  ;;  %v1837_v26 = vmul.f32 1.442695, %v1825_v16  ;;  %5026 = vpow2.f32 %v1831_v21  ;;  %v846_v16 = vld [vmem:[%s5917_s12 + $0x58] sm:$0xff] }
 0x32e   : > { %v1828_v24 = vsub.f32 0.0, %v6026_v20  ;;  %v1841_v27 = vmul.f32 1.442695, %v1827_v19  ;;  %5028 = vpow2.f32 %v1835_v23 }
 0x32f   : > { %v1839_v28 = vmul.f32 1.442695, %v1826_v22  ;;  %5030 = vpow2.f32 %v1837_v26 }
 0x330   : > { %v1843_v29 = vmul.f32 1.442695, %v1828_v24  ;;  %5032 = vpow2.f32 %v1841_v27 }
 0x331   : > { %5034 = vpow2.f32 %v1839_v28 }
 0x332   : > { %5036 = vpow2.f32 %v1843_v29 }
 0x333   : > { %5038 = vpow2.f32 %v1833_v32 }
 0x335   : > { %v5025_v54 = vpop.eup %5024 }
 0x337   : > { %v5027_v62 = vpop.eup %5026 }
 0x338   : > { %v5029_v5 = vpop.eup %5028 }
 0x339   : > { %v1753_v52 = vpop.f32.mrb[8].mxu0  ;;  %v1796_v53 = vpop.f32.mrb[8].mxu1 }
 0x33a   : > { %v1754_v56 = vadd.f32 %v1753_v52, %v1292_v39  ;;  %v1797_v57 = vadd.f32 %v1796_v53, %v1300_v42  ;;  %v1755_v59 = vpop.f32.mrb[9].mxu0  ;;  %v1798_v61 = vpop.f32.mrb[9].mxu1 }
 0x33b   : > { %v1756_v0 = vadd.f32 %v1755_v59, %v1296_v43  ;;  %v1799_v1 = vadd.f32 %v1798_v61, %v1304_v50  ;;  %v1757_v3 = vpop.f32.mrb[10].mxu0  ;;  %v1800_v4 = vpop.f32.mrb[10].mxu1  ;;  %v2213_v61 = vld [vmem:[#allocation11 + $0x40] sm:$0xff] }
 0x33c   : > { %v1758_v6 = vadd.f32 %v1757_v3, %v1292_v39  ;;  %v1801_v10 = vadd.f32 %v1800_v4, %v1300_v42  ;;  %v1759_v13 = vpop.f32.mrb[11].mxu0  ;;  %v1802_v18 = vpop.f32.mrb[11].mxu1  ;;  %v1813_v26 = vsub.f32 %v839_v55, %v1754_v56  ;;  %v1815_v27 = vsub.f32 %v841_v63, %v1797_v57  ;;  %v2217_v55 = vld [vmem:[#allocation11 + $0x60] sm:$0xff]  ;;  %v2214_v56 = vld [vmem:[#allocation11 + $0x48] sm:$0xff] }
 0x33d   : > { %v5031_v19 = vpop.eup %5030  ;;  %v1814_v21 = vsub.f32 %v840_v58, %v1756_v0  ;;  %v1816_v22 = vsub.f32 %v842_v60, %v1799_v1  ;;  %v1760_v23 = vadd.f32 %v1759_v13, %v1296_v43  ;;  %v1803_v24 = vadd.f32 %v1802_v18, %v1304_v50  ;;  %v2218_v57 = vld [vmem:[#allocation11 + $0x68] sm:$0xff] }
 0x33e   : > { %v5033_v25 = vpop.eup %5032  ;;  %v1817_v28 = vsub.f32 %v843_v2, %v1758_v6  ;;  %v1819_v29 = vsub.f32 %v845_v47, %v1801_v10  ;;  %v6067_v60 = vmul.f32 %v5025_v54, %v1813_v26  ;;  %v4387_v47 = vcombine.high %v2213_v61, %v2217_v55  ;;  %v2221_v54 = vld [vmem:[#allocation11 + $0x80] sm:$0xff]  ;;  %v2222_v10 = vld [vmem:[#allocation11 + $0x88] sm:$0xff] }
 0x33f   : > { %v5035_v32 = vpop.eup %5034  ;;  %v1818_v52 = vsub.f32 %v844_v12, %v1760_v23  ;;  %v1820_v53 = vsub.f32 %v846_v16, %v1803_v24  ;;  %v6059_v4 = vmul.f32 %v5027_v62, %v1814_v21  ;;  %v6061_v58 = vmul.f32 %v5029_v5, %v1816_v22  ;;  %v2225_v6 = vld [vmem:[#allocation11 + $0xa0] sm:$0xff]  ;;  %v2226_v12 = vld [vmem:[#allocation11 + $0xa8] sm:$0xff] }
 0x340   : > { %v5037_v59 = vpop.eup %5036  ;;  %v6055_v39 = vmul.f32 %v5031_v19, %v1817_v28  ;;  %v6057_v42 = vmul.f32 %v5033_v25, %v1819_v29  ;;  %v4389_v5 = vcombine.high %v2214_v56, %v2218_v57  ;;  %v4386_v13 = vcombine.low %v2213_v61, %v2217_v55  ;;  %v2229_v21 = vld [vmem:[#allocation11 + $0xc0] sm:$0xff]  ;;  %v2230_v23 = vld [vmem:[#allocation11 + $0xc8] sm:$0xff] }
 0x341   : > { %v5039_v3 = vpop.eup %5038  ;;  %v6063_v43 = vmul.f32 %v5035_v32, %v1818_v52  ;;  %v6065_v50 = vmul.f32 %v5037_v59, %v1820_v53  ;;  %v4388_v16 = vcombine.low %v2214_v56, %v2218_v57  ;;  %v4395_v18 = vcombine.high %v2221_v54, %v2225_v6  ;;  %v2233_v22 = vld [vmem:[#allocation11 + $0xe0] sm:$0xff]  ;;  %v2234_v24 = vld [vmem:[#allocation11 + $0xe8] sm:$0xff] }
 0x342   : > { %v6069_v63 = vmul.f32 %v5039_v3, %v1815_v27  ;;  %v1853_v1 = vpack.c.bf16 %v6055_v39, %v6067_v60  ;;  %v4397_v19 = vcombine.high %v2222_v10, %v2226_v12  ;;  %v4394_v35 = vcombine.low %v2221_v54, %v2225_v6  ;;  %v2238_v25 = vld [vmem:[#allocation11 + $0x108] sm:$0xff]  ;;  %v2245_v59 = vld [vmem:[#allocation11 + $0x140] sm:$0xff] }
 0x343   : > { %v1854_v0 = vpack.c.bf16 %v6063_v43, %v6059_v4  ;;  %v6075_v62 = vpack.c.bf16 %v6065_v50, %v6061_v58  ;;  %v4396_v36 = vcombine.low %v2222_v10, %v2226_v12  ;;  %v4403_v37 = vcombine.high %v2229_v21, %v2233_v22  ;;  %v2242_v26 = vld [vmem:[#allocation11 + $0x128] sm:$0xff]  ;;  %v2249_v61 = vld [vmem:[#allocation11 + $0x160] sm:$0xff] }
 0x344   : > { %v6081_v2 = vpack.c.bf16 %v6057_v42, %v6069_v63  ;;  %v4402_v27 = vcombine.low %v2229_v21, %v2233_v22  ;;  %v4404_v28 = vcombine.low %v2230_v23, %v2234_v24  ;;  %v4413_v32 = vcombine.high %v2238_v25, %v2242_v26  ;;  %v2246_v3 = vld [vmem:[#allocation11 + $0x148] sm:$0xff] }
 0x345   : > { %2152 = vmatprep.mubr.bf16.mxu0 %v1854_v0  ;;  %2193 = vmatprep.mubr.bf16.mxu1 %v6075_v62  ;;  %v4412_v53 = vcombine.low %v2238_v25, %v2242_v26  ;;  %v4419_v55 = vcombine.high %v2245_v59, %v2249_v61  ;;  %v2250_v56 = vld [vmem:[#allocation11 + $0x168] sm:$0xff]  ;;  %v4418_v57 = vcombine.low %v2245_v59, %v2249_v61  ;;  %v2212_v26 = vld [vmem:[#allocation11 + $0x38] sm:$0xff] }
 0x346   : > { %2153 = vmatmul.mubr.bf16.vlgmr.msra.gmra.mrb[12].mxu0 %v1853_v1  ;;  %2194 = vmatmul.mubr.bf16.vlgmr.msra.gmra.mrb[12].mxu1 %v6081_v2  ;;  %v4420_v0 = vcombine.low %v2246_v3, %v2250_v56  ;;  %v4421_v1 = vcombine.high %v2246_v3, %v2250_v56  ;;  %v2254_v54 = vld [vmem:[#allocation11 + $0x188] sm:$0xff] }
 0x347   : > { %2632 = vmatpush1.bf16.msra.mxu0 %v4378_v38  ;;  %2675 = vmatpush1.bf16.msra.mxu1 %v4380_v41  ;;  %v4405_v38 = vcombine.high %v2230_v23, %v2234_v24  ;;  %v2241_v41 = vld [vmem:[#allocation11 + $0x120] sm:$0xff]  ;;  %v2258_v10 = vld [vmem:[#allocation11 + $0x1a8] sm:$0xff] }
 0x348   : > { %2633 = vmatprep.subr.bf16.mxu0 %v4387_v47  ;;  %2676 = vmatprep.subr.bf16.mxu1 %v4389_v5  ;;  %v4411_v29 = vcombine.high %v2237_v40, %v2241_v41  ;;  %v4410_v52 = vcombine.low %v2237_v40, %v2241_v41  ;;  %v2253_v47 = vld [vmem:[#allocation11 + $0x180] sm:$0xff]  ;;  %v2262_v21 = vld [vmem:[#allocation11 + $0x1c8] sm:$0xff]  ;;  %v2208_v40 = vld [vmem:[#allocation11 + $0x18] sm:$0xff] }
 0x349   : > { %2663 = vmatprep.mubr.bf16.mxu0 %v5467_v51  ;;  %2706 = vmatprep.mubr.bf16.mxu1 %v5467_v51  ;;  %v2257_v5 = vld [vmem:[#allocation11 + $0x1a0] sm:$0xff]  ;;  %v2266_v23 = vld [vmem:[#allocation11 + $0x1e8] sm:$0xff] }
 0x34a   : > { %v4427_v6 = vcombine.high %v2253_v47, %v2257_v5  ;;  %v4426_v12 = vcombine.low %v2253_v47, %v2257_v5 }
 0x34b   : > { %2634 = vmatpush1.bf16.msra.mxu0 %v4386_v13  ;;  %2677 = vmatpush1.bf16.msra.mxu1 %v4388_v16  ;;  %v4428_v13 = vcombine.low %v2254_v54, %v2258_v10  ;;  %v4429_v16 = vcombine.high %v2254_v54, %v2258_v10 }
 0x34c   : > { %2635 = vmatprep.subr.bf16.mxu0 %v4395_v18  ;;  %2678 = vmatprep.subr.bf16.mxu1 %v4397_v19  ;;  %v2261_v18 = vld [vmem:[#allocation11 + $0x1c0] sm:$0xff] }
 0x34d   : > { %v2265_v19 = vld [vmem:[#allocation11 + $0x1e0] sm:$0xff] }
 0x34e   : > { %v4435_v22 = vcombine.high %v2261_v18, %v2265_v19  ;;  %v4434_v24 = vcombine.low %v2261_v18, %v2265_v19  ;;  %v2220_v18 = vld [vmem:[#allocation11 + $0x78] sm:$0xff] }
 0x34f   : > { %2636 = vmatpush1.bf16.msra.mxu0 %v4394_v35  ;;  %2679 = vmatpush1.bf16.msra.mxu1 %v4396_v36  ;;  %v4436_v35 = vcombine.low %v2262_v21, %v2266_v23  ;;  %v4437_v36 = vcombine.high %v2262_v21, %v2266_v23 }
 0x350   : > { %2637 = vmatprep.subr.bf16.mxu0 %v4403_v37  ;;  %2680 = vmatprep.subr.bf16.mxu1 %v4405_v38  ;;  %v2207_v37 = vld [vmem:[#allocation11 + $0x10] sm:$0xff] }
 0x351   : > { %v2211_v38 = vld [vmem:[#allocation11 + $0x30] sm:$0xff] }
 0x352   : > { %v4382_v41 = vcombine.low %v2207_v37, %v2211_v38  ;;  %v4383_v25 = vcombine.high %v2207_v37, %v2211_v38  ;;  %v2224_v37 = vld [vmem:[#allocation11 + $0x98] sm:$0xff] }
 0x353   : > { %2638 = vmatpush1.bf16.msra.mxu0 %v4402_v27  ;;  %2681 = vmatpush1.bf16.msra.mxu1 %v4404_v28  ;;  %v4384_v27 = vcombine.low %v2208_v40, %v2212_v26  ;;  %v4385_v28 = vcombine.high %v2208_v40, %v2212_v26  ;;  %v2228_v38 = vld [vmem:[#allocation11 + $0xb8] sm:$0xff] }
 0x354   : > { %2639 = vmatprep.subr.bf16.mxu0 %v4411_v29  ;;  %2682 = vmatprep.subr.bf16.mxu1 %v4413_v32 }
 0x357   : > { %2640 = vmatpush1.bf16.msra.mxu0 %v4410_v52  ;;  %2683 = vmatpush1.bf16.msra.mxu1 %v4412_v53  ;;  %v4345_v52 = vld [vmem:[#allocation10] ss:$0 sm:$0xff] }
 0x358   : > { %2641 = vmatprep.subr.bf16.mxu0 %v4419_v55  ;;  %2684 = vmatprep.subr.bf16.mxu1 %v4421_v1 }
 0x35b   : > { %2642 = vmatpush1.bf16.msra.mxu0 %v4418_v57  ;;  %2685 = vmatpush1.bf16.msra.mxu1 %v4420_v0 }
 0x35c   : > { %2643 = vmatprep.subr.bf16.mxu0 %v4427_v6  ;;  %2686 = vmatprep.subr.bf16.mxu1 %v4429_v16  ;;  %v2216_v16 = vld [vmem:[#allocation11 + $0x58] sm:$0xff] }
 0x35f   : > { %2644 = vmatpush1.bf16.msra.mxu0 %v4426_v12  ;;  %2687 = vmatpush1.bf16.msra.mxu1 %v4428_v13  ;;  %v2215_v12 = vld [vmem:[#allocation11 + $0x50] sm:$0xff] }
 0x360   : > { %2645 = vmatprep.subr.bf16.mxu0 %v4435_v22  ;;  %2688 = vmatprep.subr.bf16.mxu1 %v4437_v36  ;;  %v2219_v13 = vld [vmem:[#allocation11 + $0x70] sm:$0xff] }
 0x361   : > { %v4391_v23 = vcombine.high %v2215_v12, %v2219_v13  ;;  %v2227_v36 = vld [vmem:[#allocation11 + $0xb0] sm:$0xff]  ;;  %v4390_v40 = vcombine.low %v2215_v12, %v2219_v13  ;;  %v2252_v12 = vld [vmem:[#allocation11 + $0x178] sm:$0xff] }
 0x363   : > { %2646 = vmatpush1.bf16.msra.mxu0 %v4434_v24  ;;  %2689 = vmatpush1.bf16.msra.mxu1 %v4436_v35  ;;  %v4393_v24 = vcombine.high %v2216_v16, %v2220_v18  ;;  %v2223_v35 = vld [vmem:[#allocation11 + $0x90] sm:$0xff] }
 0x364   : > { %2717 = vmatprep.subr.bf16.mxu0 %v4383_v25  ;;  %2760 = vmatprep.subr.bf16.mxu1 %v4385_v28  ;;  %v4392_v25 = vcombine.low %v2216_v16, %v2220_v18  ;;  %v4399_v26 = vcombine.high %v2223_v35, %v2227_v36  ;;  %v4401_v28 = vcombine.high %v2224_v37, %v2228_v38 }
 0x419   : > { %v4604_v29 = vpop.f32.mrb[12].mxu0  ;;  %v4626_v32 = vpop.f32.mrb[12].mxu1 }
 0x41a   : > { %v4605_v53 = vpop.f32.mrb[13].mxu0  ;;  %v4627_v59 = vpop.f32.mrb[13].mxu1 }
 0x41b   : > { %v4606_v61 = vadd.f32 %v4605_v53, %v4604_v29  ;;  %v4628_v3 = vadd.f32 %v4627_v59, %v4626_v32  ;;  %v4607_v55 = vpop.f32.mrb[14].mxu0  ;;  %v4629_v56 = vpop.f32.mrb[14].mxu1  ;;  %v2231_v29 = vld [vmem:[#allocation11 + $0xd0] sm:$0xff]  ;;  %v2236_v53 = vld [vmem:[#allocation11 + $0xf8] sm:$0xff]  ;;  %v4398_v59 = vcombine.low %v2223_v35, %v2227_v36 }
 0x41c   : > { %v4608_v57 = vpop.f32.mrb[15].mxu0  ;;  %v4630_v0 = vpop.f32.mrb[15].mxu1  ;;  %v2235_v32 = vld [vmem:[#allocation11 + $0xf0] sm:$0xff]  ;;  %v2260_v35 = vld [vmem:[#allocation11 + $0x1b8] sm:$0xff] }
 0x41d   : > { %v2155_v1 = vadd.f32 %v4606_v61, %v4345_v52  ;;  %v4609_v47 = vadd.f32 %v4608_v57, %v4607_v55  ;;  %v4631_v5 = vadd.f32 %v4630_v0, %v4629_v56  ;;  %v4400_v61 = vcombine.low %v2224_v37, %v2228_v38  ;;  %v2243_v55 = vld [vmem:[#allocation11 + $0x130] sm:$0xff]  ;;  %v2240_v56 = vld [vmem:[#allocation11 + $0x118] sm:$0xff] }
 0x41e   : > { %v2244_v57 = vld [vmem:[#allocation11 + $0x138] sm:$0xff]  ;;  %v4406_v0 = vcombine.low %v2231_v29, %v2235_v32 }
 0x41f   : > { %v2196_v54 = vadd.f32 %v4628_v3, %v2155_v1  ;;  %v2158_v6 = vadd.f32 %v4609_v47, %v4345_v52  ;;  %v2232_v52 = vld [vmem:[#allocation11 + $0xd8] sm:$0xff]  ;;  %v2239_v3 = vld [vmem:[#allocation11 + $0x110] sm:$0xff]  ;;  %v4416_v16 = vcombine.low %v2240_v56, %v2244_v57 }
 0x420   : > { %v4408_v1 = vcombine.low %v2232_v52, %v2236_v53  ;;  %v4415_v47 = vcombine.high %v2239_v3, %v2243_v55  ;;  %v4414_v13 = vcombine.low %v2239_v3, %v2243_v55  ;;  %v4881_v3 = vld [vmem:[#allocation13] sm:$0xff]   ;;  %v4882_v55 = vld [vmem:[#allocation13 + $0x48] sm:$0xff]  }
 0x421   : > { %v2199_v10 = vadd.f32 %v4631_v5, %v2158_v6  ;;  %v2202_v19 = vmax.f32 %v2196_v54, 0.0  ;;  %v4417_v5 = vcombine.high %v2240_v56, %v2244_v57  ;;  %v2247_v54 = vld [vmem:[#allocation11 + $0x150] sm:$0xff]  ;;  %v4883_v56 = vld [vmem:[#allocation13 + $0x8] sm:$0xff]  }
 0x422   : > { %v2251_v6 = vld [vmem:[#allocation11 + $0x170] sm:$0xff] }
 0x423   : > { %v2203_v21 = vmax.f32 %v2199_v10, 0.0  ;;  %v2248_v10 = vld [vmem:[#allocation11 + $0x158] sm:$0xff]  ;;  %v4423_v18 = vcombine.high %v2247_v54, %v2251_v6  ;;  %v4422_v36 = vcombine.low %v2247_v54, %v2251_v6  ;;  %v4884_v57 = vld [vmem:[#allocation13 + $0x50] sm:$0xff]   ;;  %v4889_v54 = vld [vmem:[#allocation13 + $0x20] sm:$0xff]  }
 0x424   : > { %v4424_v37 = vcombine.low %v2248_v10, %v2252_v12  ;;  %v4891_v6 = vld [vmem:[#allocation13 + $0x28] sm:$0xff]  }
 0x425   : > { %v6093_v22 = vpack.c.bf16 %v2203_v21, %v2202_v19  ;;  %v4425_v19 = vcombine.high %v2248_v10, %v2252_v12  ;;  %v2255_v21 = vld [vmem:[#allocation11 + $0x190] sm:$0xff]  ;;  %v4894_v12 = vld [vmem:[#allocation13 + $0x78] sm:$0xff]  }
 0x426   : > { %v4893_v10 = vld [vmem:[#allocation13 + $0x30] sm:$0xff]  }
 0x427   : > { %2664 = vmatmul.mubr.bf16.vlgmr.msra.gmra.mrb[16].mxu0 %v6093_v22  ;;  %2707 = vmatmul.mubr.bf16.vlgmr.msra.gmra.mrb[16].mxu1 %v6093_v22 }
 0x428   : > { %2718 = vmatpush1.bf16.msra.mxu0 %v4382_v41  ;;  %2761 = vmatpush1.bf16.msra.mxu1 %v4384_v27  ;;  %v4407_v41 = vcombine.high %v2231_v29, %v2235_v32  ;;  %v4409_v27 = vcombine.high %v2232_v52, %v2236_v53  ;;  %v2268_v29 = vld [vmem:[#allocation11 + $0x1f8] sm:$0xff] }
 0x429   : > { %2719 = vmatprep.subr.bf16.mxu0 %v4391_v23  ;;  %2762 = vmatprep.subr.bf16.mxu1 %v4393_v24  ;;  %v2259_v23 = vld [vmem:[#allocation11 + $0x1b0] sm:$0xff]  ;;  %v2256_v24 = vld [vmem:[#allocation11 + $0x198] sm:$0xff] }
 0x42a   : > { %2749 = vmatprep.mubr.bf16.mxu0 %v5467_v51  ;;  %2792 = vmatprep.mubr.bf16.mxu1 %v5467_v51  ;;  %v4431_v38 = vcombine.high %v2255_v21, %v2259_v23  ;;  %v4430_v32 = vcombine.low %v2255_v21, %v2259_v23  ;;  %v4432_v52 = vcombine.low %v2256_v24, %v2260_v35  ;;  %v4901_v21 = vld [vmem:[#allocation14 + $0xc] ss:$16 sps:$4 sm:$0xff]   ;;  %v4904_v23 = vld [vmem:[#allocation14 + $0x24] ss:$16 sps:$4 sm:$0xff]  }
 0x42c   : > { %2720 = vmatpush1.bf16.msra.mxu0 %v4390_v40  ;;  %2763 = vmatpush1.bf16.msra.mxu1 %v4392_v25  ;;  %v4433_v40 = vcombine.high %v2256_v24, %v2260_v35  ;;  %v2263_v25 = vld [vmem:[#allocation11 + $0x1d0] sm:$0xff]  ;;  %v4907_v24 = vld [vmem:[#allocation14 + $0x2c] ss:$16 sps:$4 sm:$0xff]  }
 0x42d   : > { %2721 = vmatprep.subr.bf16.mxu0 %v4399_v26  ;;  %2764 = vmatprep.subr.bf16.mxu1 %v4401_v28  ;;  %v2267_v26 = vld [vmem:[#allocation11 + $0x1f0] sm:$0xff]  ;;  %v2264_v28 = vld [vmem:[#allocation11 + $0x1d8] sm:$0xff] }
 0x42e   : > { %v4439_v53 = vcombine.high %v2263_v25, %v2267_v26  ;;  %v4902_v35 = vld [vmem:[#allocation14 + $0x20] ss:$16 sps:$4 sm:$0xff]  }
 0x430   : > { %2722 = vmatpush1.bf16.msra.mxu0 %v4398_v59  ;;  %2765 = vmatpush1.bf16.msra.mxu1 %v4400_v61  ;;  %v4441_v59 = vcombine.high %v2264_v28, %v2268_v29  ;;  %v4438_v61 = vcombine.low %v2263_v25, %v2267_v26  ;;  %v4916_v25 = vld [vmem:[#allocation14 + $0x64] ss:$16 sps:$4 sm:$0xff]   ;;  %v4919_v26 = vld [vmem:[#allocation14 + $0x6c] ss:$16 sps:$4 sm:$0xff]  }
 0x431   : > { %2723 = vmatprep.subr.bf16.mxu0 %v4407_v41  ;;  %2766 = vmatprep.subr.bf16.mxu1 %v4409_v27  ;;  %v4440_v41 = vcombine.low %v2264_v28, %v2268_v29  ;;  %v4880_v27 = vld [vmem:[#allocation13 + $0x40] sm:$0xff]   ;;  %v4917_v29 = vld [vmem:[#allocation14 + $0x68] ss:$16 sps:$4 sm:$0xff]  }
 0x432   : > { %v4914_v28 = vld [vmem:[#allocation14 + $0x60] ss:$16 sps:$4 sm:$0xff]  }
 0x434   : > { %2724 = vmatpush1.bf16.msra.mxu0 %v4406_v0  ;;  %2767 = vmatpush1.bf16.msra.mxu1 %v4408_v1  ;;  %v4885_v0 = vld [vmem:[#allocation13 + $0x10] sm:$0xff]   ;;  %v4886_v1 = vld [vmem:[#allocation13 + $0x58] sm:$0xff]  }
 0x435   : > { %2725 = vmatprep.subr.bf16.mxu0 %v4415_v47  ;;  %2768 = vmatprep.subr.bf16.mxu1 %v4417_v5  ;;  %v4887_v47 = vld [vmem:[#allocation13 + $0x18] sm:$0xff]   ;;  %v4888_v5 = vld [vmem:[#allocation13 + $0x60] sm:$0xff]  }
 0x438   : > { %2726 = vmatpush1.bf16.msra.mxu0 %v4414_v13  ;;  %2769 = vmatpush1.bf16.msra.mxu1 %v4416_v16  ;;  %v4895_v13 = vld [vmem:[#allocation13 + $0x38] sm:$0xff]   ;;  %v4896_v16 = vld [vmem:[#allocation14] ss:$16 sps:$4 sm:$0xff]  }
 0x439   : > { %2727 = vmatprep.subr.bf16.mxu0 %v4423_v18  ;;  %2770 = vmatprep.subr.bf16.mxu1 %v4425_v19  ;;  %v4898_v18 = vld [vmem:[#allocation14 + $0x4] ss:$16 sps:$4 sm:$0xff]   ;;  %v4899_v19 = vld [vmem:[#allocation14 + $0x8] ss:$16 sps:$4 sm:$0xff]  }
 0x43c   : > { %2728 = vmatpush1.bf16.msra.mxu0 %v4422_v36  ;;  %2771 = vmatpush1.bf16.msra.mxu1 %v4424_v37  ;;  %v4905_v36 = vld [vmem:[#allocation14 + $0x28] ss:$16 sps:$4 sm:$0xff]   ;;  %v4910_v37 = vld [vmem:[#allocation14 + $0x44] ss:$16 sps:$4 sm:$0xff]  }
 0x43d   : > { %2729 = vmatprep.subr.bf16.mxu0 %v4431_v38  ;;  %2772 = vmatprep.subr.bf16.mxu1 %v4433_v40  ;;  %v4913_v38 = vld [vmem:[#allocation14 + $0x4c] ss:$16 sps:$4 sm:$0xff]   ;;  %v4911_v40 = vld [vmem:[#allocation14 + $0x48] ss:$16 sps:$4 sm:$0xff]  }
 0x440   : > { %2730 = vmatpush1.bf16.msra.mxu0 %v4430_v32  ;;  %2773 = vmatpush1.bf16.msra.mxu1 %v4432_v52  ;;  %v4922_v32 = vld [vmem:[#allocation14 + $0x84] ss:$16 sps:$4 sm:$0xff]   ;;  %v4920_v52 = vld [vmem:[#allocation14 + $0x80] ss:$16 sps:$4 sm:$0xff]  }
 0x441   : > { %2731 = vmatprep.subr.bf16.mxu0 %v4439_v53  ;;  %2774 = vmatprep.subr.bf16.mxu1 %v4441_v59  ;;  %v4925_v53 = vld [vmem:[#allocation14 + $0x8c] ss:$16 sps:$4 sm:$0xff]   ;;  %v4923_v59 = vld [vmem:[#allocation14 + $0x88] ss:$16 sps:$4 sm:$0xff]  }
 0x444   : > { %2732 = vmatpush1.bf16.msra.mxu0 %v4438_v61  ;;  %2775 = vmatpush1.bf16.msra.mxu1 %v4440_v41  ;;  %v4926_v61 = vld [vmem:[#allocation14 + $0xa0] ss:$16 sps:$4 sm:$0xff]   ;;  %v4928_v41 = vld [vmem:[#allocation14 + $0xa4] ss:$16 sps:$4 sm:$0xff]  }
 0x445   : > { %4632 = vmatprep.subr.bf16.mxu0 %v4880_v27  ;;  %3336 = vmatprep.subr.bf16.mxu1 %v4898_v18  ;;  %v4929_v27 = vld [vmem:[#allocation14 + $0xa8] ss:$16 sps:$4 sm:$0xff]  }
 0x447   : > { %2750 = vmatmul.mubr.bf16.vlgmr.msra.gmra.mrb[20].mxu0 %v6093_v22  ;;  %2793 = vmatmul.mubr.bf16.vlgmr.msra.gmra.mrb[20].mxu1 %v6093_v22  ;;  %v4890_v22 = vld [vmem:[#allocation13 + $0x68] sm:$0xff]  }
 0x448   : > { %4633 = vmatpush3.bf16.msra.mxu0 %v4881_v3  ;;  %3110 = vmatprep.mubr.bf16.mxu0 %v6075_v62  ;;  %v4892_v62 = vld [vmem:[#allocation13 + $0x70] sm:$0xff]   ;;  %v4931_v3 = vld [vmem:[#allocation14 + $0xac] ss:$16 sps:$4 sm:$0xff]  }
 0x449   : > { %4634 = vmatprep.subr.bf16.mxu0 %v4882_v55  ;;  %3368 = vmatprep.mubr.bf16.mxu1 %v5467_v51  ;;  %v4934_v55 = vld [vmem:[#allocation14 + $0xc4] ss:$16 sps:$4 sm:$0xff]  }
 0x44a   : > { %3337 = vmatpush1.bf16.msra.mxu1 %v4896_v16 }
 0x44b   : > { %3338 = vmatprep.subr.bf16.mxu1 %v4904_v23 }
 0x44c   : > { %4635 = vmatpush3.bf16.msra.mxu0 %v4883_v56  ;;  %v4937_v56 = vld [vmem:[#allocation14 + $0xcc] ss:$16 sps:$4 sm:$0xff]  }
 0x44d   : > { %4636 = vmatprep.subr.bf16.mxu0 %v4884_v57  ;;  %v4932_v57 = vld [vmem:[#allocation14 + $0xc0] ss:$16 sps:$4 sm:$0xff]  }
 0x44e   : > { %3339 = vmatpush1.bf16.msra.mxu1 %v4902_v35 }
 0x44f   : > { %3340 = vmatprep.subr.bf16.mxu1 %v4910_v37 }
 0x450   : > { %4637 = vmatpush3.bf16.msra.mxu0 %v4885_v0  ;;  %v4935_v0 = vld [vmem:[#allocation14 + $0xc8] ss:$16 sps:$4 sm:$0xff]  }
 0x451   : > { %4638 = vmatprep.subr.bf16.mxu0 %v4886_v1  ;;  %v4940_v1 = vld [vmem:[#allocation14 + $0xe4] ss:$16 sps:$4 sm:$0xff]  }
 0x454   : > { %4639 = vmatpush3.bf16.msra.mxu0 %v4887_v47  ;;  %v4943_v47 = vld [vmem:[#allocation14 + $0xec] ss:$16 sps:$4 sm:$0xff]  }
 0x455   : > { %4640 = vmatprep.subr.bf16.mxu0 %v4888_v5  ;;  %v4938_v5 = vld [vmem:[#allocation14 + $0xe0] ss:$16 sps:$4 sm:$0xff]  }
 0x458   : > { %4641 = vmatpush3.bf16.msra.mxu0 %v4889_v54  ;;  %v4941_v54 = vld [vmem:[#allocation14 + $0xe8] ss:$16 sps:$4 sm:$0xff]  }
 0x459   : > { %4642 = vmatprep.subr.bf16.mxu0 %v4890_v22  ;;  %v6108_v22 = vld [vmem:[%s6340_s8] sm:$0xff] }
 0x45c   : > { %4643 = vmatpush3.bf16.msra.mxu0 %v4891_v6  ;;  %v2274_v6 = vrot.slane %v6108_v22, %v5983_v45 }
 0x45d   : > { %4644 = vmatprep.subr.bf16.mxu0 %v4892_v62  ;;  %v2282_v62 = vrot.slane %v6108_v22, %v5986_v46 }
 0x460   : > { %4645 = vmatpush3.bf16.msra.mxu0 %v4893_v10  ;;  %v2278_v10 = vrot.slane %v6108_v22, %v5994_v48 }
 0x461   : > { %4646 = vmatprep.subr.bf16.mxu0 %v4894_v12  ;;  %v2286_v12 = vrot.slane %v6108_v22, %v5997_v49 }
 0x464   : > { %4647 = vmatpush3.bf16.msra.mxu0 %v4895_v13 }
 0x465   : > { %3379 = vmatprep.subr.bf16.mxu0 %v4901_v21 }
 0x467   : > { %3111 = vmatmul.mubr.bf16.vlgmr.msra.gmra.mrb[24].mxu0 %v6081_v2  ;;  %v4908_v2 = vld [vmem:[#allocation14 + $0x40] ss:$16 sps:$4 sm:$0xff]  }
 0x468   : > { %3411 = vmatprep.mubr.bf16.mxu0 %v5467_v51  ;;  %3380 = vmatpush1.bf16.msra.mxu0 %v4899_v19 }
 0x469   : > { %3381 = vmatprep.subr.bf16.mxu0 %v4907_v24  ;;  %3341 = vmatpush1.bf16.msra.mxu1 %v4908_v2 }
 0x46a   : > { %3342 = vmatprep.subr.bf16.mxu1 %v4916_v25 }
 0x46c   : > { %3382 = vmatpush1.bf16.msra.mxu0 %v4905_v36 }
 0x46d   : > { %3383 = vmatprep.subr.bf16.mxu0 %v4913_v38  ;;  %3343 = vmatpush1.bf16.msra.mxu1 %v4914_v28 }
 0x46e   : > { %3344 = vmatprep.subr.bf16.mxu1 %v4922_v32 }
 0x470   : > { %3384 = vmatpush1.bf16.msra.mxu0 %v4911_v40 }
 0x471   : > { %3385 = vmatprep.subr.bf16.mxu0 %v4919_v26  ;;  %3345 = vmatpush1.bf16.msra.mxu1 %v4920_v52 }
 0x472   : > { %3346 = vmatprep.subr.bf16.mxu1 %v4928_v41 }
 0x474   : > { %3386 = vmatpush1.bf16.msra.mxu0 %v4917_v29 }
 0x475   : > { %3387 = vmatprep.subr.bf16.mxu0 %v4925_v53  ;;  %3347 = vmatpush1.bf16.msra.mxu1 %v4926_v61 }
 0x476   : > { %3348 = vmatprep.subr.bf16.mxu1 %v4934_v55 }
 0x478   : > { %3388 = vmatpush1.bf16.msra.mxu0 %v4923_v59 }
 0x479   : > { %3389 = vmatprep.subr.bf16.mxu0 %v4931_v3  ;;  %3349 = vmatpush1.bf16.msra.mxu1 %v4932_v57 }
 0x47a   : > { %3350 = vmatprep.subr.bf16.mxu1 %v4940_v1 }
 0x47c   : > { %3390 = vmatpush1.bf16.msra.mxu0 %v4929_v27 }
 0x47d   : > { %3391 = vmatprep.subr.bf16.mxu0 %v4937_v56  ;;  %3351 = vmatpush1.bf16.msra.mxu1 %v4938_v5 }
 0x480   : > { %3392 = vmatpush1.bf16.msra.mxu0 %v4935_v0 }
 0x481   : > { %3393 = vmatprep.subr.bf16.mxu0 %v4943_v47 }
 0x484   : > { %3394 = vmatpush1.bf16.msra.mxu0 %v4941_v54 }
 0x4fa   : > { %v2665_v13 = vpop.f32.mrb[16].mxu0  ;;  %v2708_v16 = vpop.f32.mrb[16].mxu1 }
 0x4fb   : > { %v2666_v18 = vadd.f32 %v2665_v13, %v2274_v6  ;;  %v2709_v19 = vadd.f32 %v2708_v16, %v2282_v62  ;;  %v2667_v21 = vpop.f32.mrb[17].mxu0  ;;  %v2710_v23 = vpop.f32.mrb[17].mxu1 }
 0x4fc   : > { %v2668_v24 = vadd.f32 %v2667_v21, %v2278_v10  ;;  %v2711_v35 = vadd.f32 %v2710_v23, %v2286_v12  ;;  %v2669_v36 = vpop.f32.mrb[18].mxu0  ;;  %v2712_v37 = vpop.f32.mrb[18].mxu1  ;;  %v2881_v21 = vld [vmem:[%s6415_s2] sm:$0xf]  ;;  %v2290_v23 = vrot.slane %v6108_v22, %v1291_v30 }
 0x4fd   : > { %5040 = vtanh.f32 %v2666_v18  ;;  %v2670_v38 = vadd.f32 %v2669_v36, %v2274_v6  ;;  %v2671_v2 = vpop.f32.mrb[19].mxu0  ;;  %v2714_v40 = vpop.f32.mrb[19].mxu1  ;;  %v2713_v25 = vadd.f32 %v2712_v37, %v2282_v62  ;;  %v2302_v36 = vrot.slane %v6108_v22, %v1303_v34 }
 0x4fe   : > { %5042 = vtanh.f32 %v2709_v19  ;;  %v2672_v26 = vadd.f32 %v2671_v2, %v2278_v10  ;;  %v2715_v28 = vadd.f32 %v2714_v40, %v2286_v12  ;;  %v2851_v19 = vld [vmem:[%s6341_s9] sm:$0xf]  ;;  %v6155_v44 = vrot.slane %v2881_v21, %v5986_v46 }
 0x4ff   : > { %5044 = vtanh.f32 %v2668_v24  ;;  %v2298_v24 = vrot.slane %v6108_v22, %v1299_v31  ;;  %v6137_v37 = vrot.slane %v2851_v19, %v5983_v45  ;;  %v6143_v30 = vrot.slane %v2851_v19, %v5986_v46 }
 0x500   : > { %5046 = vtanh.f32 %v2711_v35  ;;  %v2294_v35 = vrot.slane %v6108_v22, %v1295_v33  ;;  %v6146_v2 = vrot.slane %v2851_v19, %v5994_v48  ;;  %v6149_v31 = vrot.slane %v2881_v21, %v5994_v48 }
 0x501   : > { %5048 = vtanh.f32 %v2670_v38  ;;  %v6140_v38 = vrot.slane %v2881_v21, %v5983_v45  ;;  %v6152_v33 = vrot.slane %v2851_v19, %v5997_v49  ;;  %v6158_v34 = vrot.slane %v2881_v21, %v5997_v49 }
 0x502   : > { %5050 = vtanh.f32 %v2713_v25 }
 0x503   : > { %5052 = vtanh.f32 %v2672_v26 }
 0x504   : > { %5054 = vtanh.f32 %v2715_v28 }
 0x507   : > { %v5041_v29 = vpop.eup %5040 }
 0x508   : > { %v5043_v32 = vpop.eup %5042  ;;  %v2819_v52 = vsub.f32 0.0, %v5041_v29  ;;  %v6161_v26 = vadd.f32 %v5041_v29, %v6007_v7 }
 0x509   : > { %v5045_v53 = vpop.eup %5044  ;;  %v2821_v59 = vsub.f32 0.0, %v5043_v32 }
 0x50a   : > { %v5047_v61 = vpop.eup %5046  ;;  %v2820_v41 = vsub.f32 0.0, %v5045_v53  ;;  %v2827_v56 = vmul.f32 1.442695, %v2819_v52  ;;  %v6164_v28 = vadd.f32 %v5045_v53, %v6011_v9  ;;  %v6167_v52 = vadd.f32 %v5043_v32, %v6009_v8 }
 0x50b   : > { %v5049_v27 = vpop.eup %5048  ;;  %v2822_v3 = vsub.f32 0.0, %v5047_v61  ;;  %v2831_v1 = vmul.f32 1.442695, %v2821_v59  ;;  %v6170_v59 = vadd.f32 %v5047_v61, %v6014_v11 }
 0x50c   : > { %v5051_v55 = vpop.eup %5050  ;;  %v2823_v57 = vsub.f32 0.0, %v5049_v27  ;;  %v2829_v54 = vmul.f32 1.442695, %v2820_v41  ;;  %5056 = vpow2.f32 %v2827_v56 }
 0x50d   : > { %v5053_v0 = vpop.eup %5052  ;;  %v2825_v47 = vsub.f32 0.0, %v5051_v55  ;;  %v2833_v62 = vmul.f32 1.442695, %v2822_v3  ;;  %5058 = vpow2.f32 %v2831_v1  ;;  %v6176_v7 = vadd.f32 %v5051_v55, %v6020_v15 }
 0x50e   : > { %v5055_v5 = vpop.eup %5054  ;;  %v2824_v6 = vsub.f32 0.0, %v5053_v0  ;;  %v2835_v12 = vmul.f32 1.442695, %v2823_v57  ;;  %5060 = vpow2.f32 %v2829_v54  ;;  %v6179_v53 = vadd.f32 %v5053_v0, %v6023_v17  ;;  %v5107_v17 = vld [vmem:[%s5917_s12 + $0x38] sm:$0xff] }
 0x50f   : > { %v2826_v10 = vsub.f32 0.0, %v5055_v5  ;;  %v2839_v13 = vmul.f32 1.442695, %v2825_v47  ;;  %5062 = vpow2.f32 %v2833_v62  ;;  %v6173_v47 = vadd.f32 %v5049_v27, %v6017_v14  ;;  %v5105_v27 = vld [vmem:[%s5917_s12 + $0x30] sm:$0xff] }
 0x510   : > { %v2837_v16 = vmul.f32 1.442695, %v2824_v6  ;;  %5064 = vpow2.f32 %v2835_v12  ;;  %v6182_v61 = vadd.f32 %v5055_v5, %v6026_v20  ;;  %v5104_v6 = vld [vmem:[%s5917_s12 + $0x20] sm:$0xff] }
 0x511   : > { %v2841_v18 = vmul.f32 1.442695, %v2826_v10  ;;  %5066 = vpow2.f32 %v2839_v13 }
 0x512   : > { %5068 = vpow2.f32 %v2837_v16  ;;  %v5106_v16 = vld [vmem:[%s5917_s12 + $0x28] sm:$0xff] }
 0x513   : > { %5070 = vpow2.f32 %v2841_v18 }
 0x516   : > { %v5057_v22 = vpop.eup %5056 }
 0x517   : > { %v5059_v41 = vpop.eup %5058 }
 0x518   : > { %v5061_v9 = vpop.eup %5060 }
 0x519   : > { %v5063_v54 = vpop.eup %5062 }
 0x51a   : > { %v2751_v40 = vpop.f32.mrb[20].mxu0  ;;  %v2794_v25 = vpop.f32.mrb[20].mxu1 }
 0x51b   : > { %v2752_v3 = vadd.f32 %v2751_v40, %v2290_v23  ;;  %v2795_v56 = vadd.f32 %v2794_v25, %v2298_v24  ;;  %v2753_v57 = vpop.f32.mrb[21].mxu0  ;;  %v2796_v1 = vpop.f32.mrb[21].mxu1  ;;  %v5108_v25 = vld [vmem:[%s5917_s12 + $0x60] sm:$0xff] }
 0x51c   : > { %v2754_v29 = vadd.f32 %v2753_v57, %v2294_v35  ;;  %v2797_v8 = vadd.f32 %v2796_v1, %v2302_v36  ;;  %v2755_v32 = vpop.f32.mrb[22].mxu0  ;;  %v2798_v11 = vpop.f32.mrb[22].mxu1 }
 0x51d   : > { %v2811_v14 = vsub.f32 %v5104_v6, %v2752_v3  ;;  %v2813_v15 = vsub.f32 %v5105_v27, %v2795_v56  ;;  %v2756_v55 = vadd.f32 %v2755_v32, %v2290_v23  ;;  %v2799_v62 = vadd.f32 %v2798_v11, %v2298_v24  ;;  %v2757_v10 = vpop.f32.mrb[23].mxu0  ;;  %v2800_v12 = vpop.f32.mrb[23].mxu1  ;;  %v5109_v56 = vld [vmem:[%s5917_s12 + $0x70] sm:$0xff]  ;;  %v5110_v32 = vld [vmem:[%s5917_s12 + $0x68] sm:$0xff]  ;;  %v5111_v6 = vld [vmem:[%s5917_s12 + $0x78] sm:$0xff]  ;;  %s6416_s12 = sld [smem:[#allocation35_spill]] }
 0x51e   : > { %v5065_v13 = vpop.eup %5064  ;;  %v2812_v18 = vsub.f32 %v5106_v16, %v2754_v29  ;;  %v2814_v0 = vsub.f32 %v5107_v17, %v2797_v8  ;;  %v2758_v20 = vadd.f32 %v2757_v10, %v2294_v35  ;;  %v2801_v5 = vadd.f32 %v2800_v12, %v2302_v36 }
 0x51f   : > { %v5067_v19 = vpop.eup %5066  ;;  %v2843_v21 = vmul.f32 %v5057_v22, %v2811_v14  ;;  %v2845_v40 = vmul.f32 %v5059_v41, %v2813_v15  ;;  %v2815_v3 = vsub.f32 %v5108_v25, %v2756_v55  ;;  %v2817_v23 = vsub.f32 %v5109_v56, %v2799_v62 }
 0x520   : > { %v5069_v57 = vpop.eup %5068  ;;  %v2844_v24 = vmul.f32 %v5061_v9, %v2812_v18  ;;  %v2846_v1 = vmul.f32 %v5063_v54, %v2814_v0  ;;  %v2816_v11 = vsub.f32 %v5110_v32, %v2758_v20  ;;  %v2818_v27 = vsub.f32 %v5111_v6, %v2801_v5 }
 0x521   : > { %v5071_v29 = vpop.eup %5070  ;;  %v2873_v16 = vsub.f32 %v2843_v21, %v6137_v37  ;;  %v2875_v35 = vsub.f32 %v2845_v40, %v6143_v30  ;;  %v2847_v36 = vmul.f32 %v5065_v13, %v2815_v3  ;;  %v2849_v8 = vmul.f32 %v5067_v19, %v2817_v23 }
 0x522   : > { %v2874_v22 = vsub.f32 %v2844_v24, %v6146_v2  ;;  %v2876_v41 = vsub.f32 %v2846_v1, %v6152_v33  ;;  %v2848_v14 = vmul.f32 %v5069_v57, %v2816_v11  ;;  %v2850_v15 = vmul.f32 %v5071_v29, %v2818_v27 }
 0x523   : > { %v2903_v9 = vmul.f32 %v6140_v38, %v2873_v16  ;;  %v2877_v54 = vsub.f32 %v2847_v36, %v6137_v37  ;;  %v2879_v55 = vsub.f32 %v2849_v8, %v6143_v30  ;;  %v2905_v62 = vmul.f32 %v6155_v44, %v2875_v35 }
 0x524   : > { %v2904_v10 = vmul.f32 %v6149_v31, %v2874_v22  ;;  %v2878_v12 = vsub.f32 %v2848_v14, %v6146_v2  ;;  %v2880_v13 = vsub.f32 %v2850_v15, %v6152_v33  ;;  %v2906_v18 = vmul.f32 %v6158_v34, %v2876_v41 }
 0x525   : > { %v2907_v17 = vmul.f32 %v6140_v38, %v2877_v54  ;;  %v2919_v0 = vmul.f32 %v2903_v9, %v2903_v9  ;;  %v2921_v20 = vmul.f32 %v2905_v62, %v2905_v62  ;;  %v2909_v5 = vmul.f32 %v6155_v44, %v2879_v55  ;;  %v4944_v62 = vld [vmem:[#allocation16 + $0x40] sm:$0xff]  }
 0x526   : > { %v2908_v37 = vmul.f32 %v6149_v31, %v2878_v12  ;;  %v2920_v19 = vmul.f32 %v2904_v10, %v2904_v10  ;;  %v2922_v30 = vmul.f32 %v2906_v18, %v2906_v18  ;;  %v2910_v21 = vmul.f32 %v6158_v34, %v2880_v13  ;;  %v4945_v10 = vld [vmem:[#allocation16] sm:$0xff]   ;;  %4654 = vmatprep.subr.bf16.mxu1 %v4944_v62  ;;  %v4946_v12 = vld [vmem:[#allocation16 + $0x48] sm:$0xff]   ;;  %v4948_v18 = vld [vmem:[#allocation16 + $0x50] sm:$0xff]  }
 0x527   : > { %v2927_v40 = vmul.f32 0.5, %v2919_v0  ;;  %v2929_v25 = vmul.f32 0.5, %v2921_v20  ;;  %v2923_v3 = vmul.f32 %v2907_v17, %v2907_v17  ;;  %v2925_v2 = vmul.f32 %v2909_v5, %v2909_v5  ;;  %v4947_v13 = vld [vmem:[#allocation16 + $0x8] sm:$0xff]   ;;  %v4949_v17 = vld [vmem:[#allocation16 + $0x10] sm:$0xff]   ;;  %v4950_v0 = vld [vmem:[#allocation16 + $0x58] sm:$0xff]  }
 0x528   : > { %v2928_v56 = vmul.f32 0.5, %v2920_v19  ;;  %v2930_v33 = vmul.f32 0.5, %v2922_v30  ;;  %v2924_v23 = vmul.f32 %v2908_v37, %v2908_v37  ;;  %v2926_v57 = vmul.f32 %v2910_v21, %v2910_v21  ;;  %v4951_v20 = vld [vmem:[#allocation16 + $0x18] sm:$0xff]   ;;  %v4952_v5 = vld [vmem:[#allocation16 + $0x60] sm:$0xff]   ;;  %v4954_v19 = vld [vmem:[#allocation16 + $0x68] sm:$0xff]  }
 0x529   : > { %v2935_v38 = vadd.f32 %v2927_v40, %v6161_v26  ;;  %v2937_v24 = vadd.f32 %v2929_v25, %v6167_v52  ;;  %v2931_v1 = vmul.f32 0.5, %v2923_v3  ;;  %v2933_v44 = vmul.f32 0.5, %v2925_v2  ;;  %v4953_v37 = vld [vmem:[#allocation16 + $0x20] sm:$0xff]   ;;  %v4955_v30 = vld [vmem:[#allocation16 + $0x28] sm:$0xff]   ;;  %v4956_v21 = vld [vmem:[#allocation16 + $0x70] sm:$0xff]  }
 0x52a   : > { %v2936_v31 = vadd.f32 %v2928_v56, %v6164_v28  ;;  %v2938_v32 = vadd.f32 %v2930_v33, %v6170_v59  ;;  %v2932_v11 = vmul.f32 0.5, %v2924_v23  ;;  %v2934_v34 = vmul.f32 0.5, %v2926_v57  ;;  %v4442_v59 = vld [vmem:[%s6416_s12] ss:$0 sm:$0xff]  ;;  %v4957_v40 = vld [vmem:[#allocation16 + $0x30] sm:$0xff]  }
 0x52b   : > { %v2939_v6 = vadd.f32 %v2931_v1, %v6173_v47  ;;  %v2941_v27 = vadd.f32 %v2933_v44, %v6176_v7  ;;  %v4958_v25 = vld [vmem:[#allocation16 + $0x78] sm:$0xff]   ;;  %v4960_v2 = vld [vmem:[#allocation17] ss:$16 sps:$4 sm:$0xff]   ;;  %v4962_v56 = vld [vmem:[#allocation17 + $0x4] ss:$16 sps:$4 sm:$0xff]  }
 0x52c   : > { %v4039_v29 = vadd.f32 %v2936_v31, %v2935_v38  ;;  %v2940_v16 = vadd.f32 %v2932_v11, %v6179_v53  ;;  %v2942_v35 = vadd.f32 %v2934_v34, %v6182_v61  ;;  %v4959_v3 = vld [vmem:[#allocation16 + $0x38] sm:$0xff]   ;;  %v4968_v23 = vld [vmem:[#allocation17 + $0x24] ss:$16 sps:$4 sm:$0xff]   ;;  %3841 = vmatprep.subr.bf16.mxu0 %v4962_v56  ;;  %v4966_v57 = vld [vmem:[#allocation17 + $0x20] ss:$16 sps:$4 sm:$0xff]  }
 0x52d   : > { %v4965_v33 = vld [vmem:[#allocation17 + $0xc] ss:$16 sps:$4 sm:$0xff]   ;;  %v4974_v38 = vld [vmem:[#allocation17 + $0x44] ss:$16 sps:$4 sm:$0xff]   ;;  %v4978_v44 = vld [vmem:[#allocation17 + $0x60] ss:$16 sps:$4 sm:$0xff]  }
 0x52e   : > { %v4040_v26 = vadd.f32 %v4039_v29, %v2937_v24  ;;  %v4044_v36 = vadd.f32 %v2940_v16, %v2939_v6  ;;  %v4972_v24 = vld [vmem:[#allocation17 + $0x40] ss:$16 sps:$4 sm:$0xff]   ;;  %v4980_v1 = vld [vmem:[#allocation17 + $0x64] ss:$16 sps:$4 sm:$0xff]  }
 0x52f   : > { %v4986_v31 = vld [vmem:[#allocation17 + $0x84] ss:$16 sps:$4 sm:$0xff]   ;;  %v3154_v11 = vld [vmem:[%s6417_s10] sm:$0xf] }
 0x530   : > { %v4041_v52 = vadd.f32 %v4040_v26, %v2938_v32  ;;  %v4045_v8 = vadd.f32 %v4044_v36, %v2941_v27  ;;  %v4984_v32 = vld [vmem:[#allocation17 + $0x80] ss:$16 sps:$4 sm:$0xff]   ;;  %v3159_v34 = vrot.slane %v3154_v11, %v5983_v45  ;;  %v3163_v6 = vrot.slane %v3154_v11, %v5994_v48 }
 0x532   : > { %4042 = vadd.xlane.f32.xlu0 %v4041_v52  ;;  %v4046_v22 = vadd.f32 %v4045_v8, %v2942_v35 }
 0x534   : > { %4047 = vadd.xlane.f32.xlu1 %v4046_v22 }
 0x53a   : > { %v4648_v28 = vpop.f32.mrb[24].mxu0 }
 0x53b   : > { %v4649_v47 = vpop.f32.mrb[25].mxu0 }
 0x53c   : > { %v4650_v41 = vadd.f32 %v4649_v47, %v4648_v28  ;;  %v4651_v7 = vpop.f32.mrb[26].mxu0 }
 0x53d   : > { %v4652_v14 = vpop.f32.mrb[27].mxu0 }
 0x53e   : > { %v3113_v15 = vadd.f32 %v4650_v41, %v4442_v59  ;;  %v4653_v53 = vadd.f32 %v4652_v14, %v4651_v7 }
 0x540   : > { %v3116_v9 = vadd.f32 %v4653_v53, %v4442_v59  ;;  %v3119_v61 = vmax.f32 %v3113_v15, 0.0 }
 0x542   : > { %v3120_v54 = vmax.f32 %v3116_v9, 0.0 }
 0x544   : > { %v3121_v55 = vpack.c.bf16 %v3120_v54, %v3119_v61 }
 0x546   : > { %3369 = vmatmul.mubr.bf16.vlgmr.msra.gmra.mrb[24].mxu1 %v3121_v55  ;;  %3412 = vmatmul.mubr.bf16.vlgmr.msra.gmra.mrb[28].mxu0 %v3121_v55 }
 0x547   : > { %3873 = vmatprep.mubr.bf16.mxu0 %v5467_v51  ;;  %4655 = vmatpush3.bf16.msra.mxu1 %v4945_v10 }
 0x548   : > { %4656 = vmatprep.subr.bf16.mxu1 %v4946_v12  ;;  %3842 = vmatpush1.bf16.msra.mxu0 %v4960_v2 }
 0x549   : > { %3843 = vmatprep.subr.bf16.mxu0 %v4968_v23 }
 0x54b   : > { %4657 = vmatpush3.bf16.msra.mxu1 %v4947_v13  ;;  %v3167_v13 = vrot.slane %v3154_v11, %v5986_v46 }
 0x54c   : > { %4658 = vmatprep.subr.bf16.mxu1 %v4948_v18  ;;  %3844 = vmatpush1.bf16.msra.mxu0 %v4966_v57  ;;  %v3171_v18 = vrot.slane %v3154_v11, %v5997_v49  ;;  %v4987_v11 = vld [vmem:[#allocation17 + $0x88] ss:$16 sps:$4 sm:$0xff]  }
 0x54d   : > { %3845 = vmatprep.subr.bf16.mxu0 %v4974_v38 }
 0x54f   : > { %4659 = vmatpush3.bf16.msra.mxu1 %v4949_v17 }
 0x550   : > { %4660 = vmatprep.subr.bf16.mxu1 %v4950_v0  ;;  %3846 = vmatpush1.bf16.msra.mxu0 %v4972_v24  ;;  %v4971_v24 = vld [vmem:[#allocation17 + $0x2c] ss:$16 sps:$4 sm:$0xff]  }
 0x551   : > { %3847 = vmatprep.subr.bf16.mxu0 %v4980_v1  ;;  %v4975_v1 = vld [vmem:[#allocation17 + $0x48] ss:$16 sps:$4 sm:$0xff]  }
 0x553   : > { %4661 = vmatpush3.bf16.msra.mxu1 %v4951_v20 }
 0x554   : > { %4662 = vmatprep.subr.bf16.mxu1 %v4952_v5  ;;  %3848 = vmatpush1.bf16.msra.mxu0 %v4978_v44  ;;  %v4983_v44 = vld [vmem:[#allocation17 + $0x6c] ss:$16 sps:$4 sm:$0xff]  }
 0x555   : > { %3849 = vmatprep.subr.bf16.mxu0 %v4986_v31  ;;  %v4981_v31 = vld [vmem:[#allocation17 + $0x68] ss:$16 sps:$4 sm:$0xff]  }
 0x557   : > { %4663 = vmatpush3.bf16.msra.mxu1 %v4953_v37 }
 0x558   : > { %4664 = vmatprep.subr.bf16.mxu1 %v4954_v19  ;;  %3850 = vmatpush1.bf16.msra.mxu0 %v4984_v32  ;;  %v4989_v32 = vld [vmem:[#allocation17 + $0x8c] ss:$16 sps:$4 sm:$0xff]  }
 0x55b   : > { %4665 = vmatpush3.bf16.msra.mxu1 %v4955_v30 }
 0x55c   : > { %4666 = vmatprep.subr.bf16.mxu1 %v4956_v21 }
 0x55f   : > { %4667 = vmatpush3.bf16.msra.mxu1 %v4957_v40 }
 0x560   : > { %4668 = vmatprep.subr.bf16.mxu1 %v4958_v25 }
 0x563   : > { %4669 = vmatpush3.bf16.msra.mxu1 %v4959_v3 }
 0x564   : > { %3884 = vmatprep.subr.bf16.mxu1 %v4965_v33 }
 0x619   : > { %v3370_v27 = vpop.f32.mrb[24].mxu1  ;;  %v3413_v29 = vpop.f32.mrb[28].mxu0 }
 0x61a   : > { %v3371_v16 = vadd.f32 %v3370_v27, %v3159_v34  ;;  %v3372_v35 = vpop.f32.mrb[25].mxu1  ;;  %v3415_v26 = vpop.f32.mrb[29].mxu0  ;;  %v3414_v17 = vadd.f32 %v3413_v29, %v3167_v13  ;;  %v4993_v27 = vld [vmem:[#allocation17 + $0xa8] ss:$16 sps:$4 sm:$0xff]   ;;  %v4995_v29 = vld [vmem:[#allocation17 + $0xac] ss:$16 sps:$4 sm:$0xff]  }
 0x61b   : > { %v3373_v36 = vadd.f32 %v3372_v35, %v3163_v6  ;;  %v3374_v52 = vpop.f32.mrb[26].mxu1  ;;  %v3417_v8 = vpop.f32.mrb[30].mxu0  ;;  %v3416_v20 = vadd.f32 %v3415_v26, %v3171_v18  ;;  %v4996_v35 = vld [vmem:[#allocation17 + $0xc0] ss:$16 sps:$4 sm:$0xff]   ;;  %v4999_v26 = vld [vmem:[#allocation17 + $0xc8] ss:$16 sps:$4 sm:$0xff]  }
 0x61c   : > { %5072 = vtanh.f32 %v3371_v16  ;;  %v3375_v22 = vadd.f32 %v3374_v52, %v3159_v34  ;;  %v3376_v28 = vpop.f32.mrb[27].mxu1  ;;  %v3419_v59 = vpop.f32.mrb[31].mxu0  ;;  %v3418_v0 = vadd.f32 %v3417_v8, %v3167_v13  ;;  %v3426_v30 = vsub.f32 %v6067_v60, %v3414_v17  ;;  %v4963_v60 = vld [vmem:[#allocation17 + $0x8] ss:$16 sps:$4 sm:$0xff]   ;;  %v4990_v34 = vld [vmem:[#allocation17 + $0xa0] ss:$16 sps:$4 sm:$0xff]  }
 0x61d   : > { %5074 = vtanh.f32 %v3373_v36  ;;  %v3377_v47 = vadd.f32 %v3376_v28, %v3163_v6  ;;  %v3420_v5 = vadd.f32 %v3419_v59, %v3171_v18  ;;  %v3427_v25 = vsub.f32 %v6059_v4, %v3416_v20  ;;  %v4969_v4 = vld [vmem:[#allocation17 + $0x28] ss:$16 sps:$4 sm:$0xff]   ;;  %v4992_v6 = vld [vmem:[#allocation17 + $0xa4] ss:$16 sps:$4 sm:$0xff]   ;;  %v5001_v16 = vld [vmem:[#allocation17 + $0xcc] ss:$16 sps:$4 sm:$0xff]  }
 0x61e   : > { %5076 = vtanh.f32 %v3375_v22  ;;  %v3428_v21 = vsub.f32 %v6055_v39, %v3418_v0  ;;  %3851 = vmatprep.subr.bf16.mxu0 %v4992_v6  ;;  %v5004_v36 = vld [vmem:[#allocation17 + $0xe4] ss:$16 sps:$4 sm:$0xff]   ;;  %v5007_v52 = vld [vmem:[#allocation17 + $0xec] ss:$16 sps:$4 sm:$0xff]   ;;  %v5002_v8 = vld [vmem:[#allocation17 + $0xe0] ss:$16 sps:$4 sm:$0xff]  }
 0x61f   : > { %5078 = vtanh.f32 %v3377_v47  ;;  %v3429_v3 = vsub.f32 %v6063_v43, %v3420_v5  ;;  %v4977_v43 = vld [vmem:[#allocation17 + $0x4c] ss:$16 sps:$4 sm:$0xff]   ;;  %3852 = vmatpush1.bf16.msra.mxu0 %v4990_v34  ;;  %v5005_v22 = vld [vmem:[#allocation17 + $0xe8] ss:$16 sps:$4 sm:$0xff]  }
 0x620   : > { %v4491_v59 = vld [vmem:[%s6418_s25] ss:$0 sm:$0xff] }
 0x621   : > { %v4057_v18 = vld [vmem:[#allocation2] sm:$0x1] }
 0x622   : > { %4676 = vpush %v4057_v18  ;;  %v3659_v17 = vld [vmem:[%s6419_s29] sm:$0xf] }
 0x623   : > { %v3664_v0 = vrot.slane %v3659_v17, %v5983_v45  ;;  %v3668_v20 = vrot.slane %v3659_v17, %v5994_v48 }
 0x626   : > { %v6225_v41 = vpop.eup %5072 }
 0x627   : > { %v6227_v7 = vpop.eup %5074  ;;  %v3430_v14 = vsub.f32 0.0, %v6225_v41 }
 0x628   : > { %v6230_v15 = vpop.eup %5076  ;;  %v3431_v53 = vsub.f32 0.0, %v6227_v7 }
 0x629   : > { %v6233_v9 = vpop.eup %5078  ;;  %v3434_v61 = vmul.f32 1.442695, %v3430_v14  ;;  %v3432_v54 = vsub.f32 0.0, %v6230_v15 }
 0x62a   : > { %v3436_v55 = vmul.f32 1.442695, %v3431_v53  ;;  %v3433_v62 = vsub.f32 0.0, %v6233_v9 }
 0x62b   : > { %5080 = vpow2.f32 %v3434_v61  ;;  %v3438_v10 = vmul.f32 1.442695, %v3432_v54 }
 0x62c   : > { %5082 = vpow2.f32 %v3436_v55  ;;  %v3440_v12 = vmul.f32 1.442695, %v3433_v62 }
 0x62d   : > { %5084 = vpow2.f32 %v3438_v10 }
 0x62e   : > { %5086 = vpow2.f32 %v3440_v12 }
 0x635   : > { %v5081_v37 = vpop.eup %5080 }
 0x636   : > { %v5083_v19 = vpop.eup %5082  ;;  %v6243_v56 = vmul.f32 %v5081_v37, %v3426_v30 }
 0x637   : > { %v5085_v40 = vpop.eup %5084  ;;  %v6247_v23 = vmul.f32 %v5083_v19, %v3427_v25 }
 0x638   : > { %v5087_v2 = vpop.eup %5086  ;;  %v6245_v33 = vmul.f32 %v5085_v40, %v3428_v21 }
 0x639   : > { %v6249_v57 = vmul.f32 %v5087_v2, %v3429_v3 }
 0x63a   : > { %v3446_v38 = vpack.c.bf16 %v6245_v33, %v6243_v56 }
 0x63b   : > { %v3447_v39 = vpack.c.bf16 %v6249_v57, %v6247_v23 }
 0x63d   : > { %3615 = vmatprep.mubr.bf16.mxu1 %v3447_v39 }
 0x63e   : > { %3616 = vmatmul.mubr.bf16.vlgmr.msra.gmra.mrb[28].mxu1 %v3446_v38 }
 0x63f   : > { %3885 = vmatpush1.bf16.msra.mxu1 %v4963_v60  ;;  %3916 = vmatprep.mubr.bf16.mxu1 %v5467_v51  ;;  %v4998_v51 = vld [vmem:[#allocation17 + $0xc4] ss:$16 sps:$4 sm:$0xff]  }
 0x640   : > { %3886 = vmatprep.subr.bf16.mxu1 %v4971_v24  ;;  %3853 = vmatprep.subr.bf16.mxu0 %v4998_v51 }
 0x641   : > { %3854 = vmatpush1.bf16.msra.mxu0 %v4996_v35  ;;  %v3676_v35 = vrot.slane %v3659_v17, %v5997_v49  ;;  %v3999_v49 = vld [vmem:[%s6421_s5 + $0x2] sm:$0x3] }
 0x642   : > { %3855 = vmatprep.subr.bf16.mxu0 %v5004_v36 }
 0x643   : > { %3887 = vmatpush1.bf16.msra.mxu1 %v4969_v4 }
 0x644   : > { %3888 = vmatprep.subr.bf16.mxu1 %v4977_v43 }
 0x645   : > { %3856 = vmatpush1.bf16.msra.mxu0 %v5002_v8  ;;  %v3983_v8 = vld [vmem:[%s6420_s6 + $0x2] sm:$0x3] }
 0x647   : > { %3889 = vmatpush1.bf16.msra.mxu1 %v4975_v1 }
 0x648   : > { %3890 = vmatprep.subr.bf16.mxu1 %v4983_v44 }
 0x64b   : > { %3891 = vmatpush1.bf16.msra.mxu1 %v4981_v31 }
 0x64c   : > { %3892 = vmatprep.subr.bf16.mxu1 %v4989_v32 }
 0x64f   : > { %3893 = vmatpush1.bf16.msra.mxu1 %v4987_v11 }
 0x650   : > { %3894 = vmatprep.subr.bf16.mxu1 %v4995_v29  ;;  %v3672_v29 = vrot.slane %v3659_v17, %v5986_v46 }
 0x653   : > { %3895 = vmatpush1.bf16.msra.mxu1 %v4993_v27  ;;  %s4677_s25 = spop %4676 }
 0x654   : > { %3896 = vmatprep.subr.bf16.mxu1 %v5001_v16  ;;  %v3951_v16 = vld [vmem:[%s6420_s6] sm:$0x3] }
 0x657   : > { %3897 = vmatpush1.bf16.msra.mxu1 %v4999_v26  ;;  %v3956_v26 = vrot.slane %v3951_v16, %v5983_v45 }
 0x658   : > { %3898 = vmatprep.subr.bf16.mxu1 %v5007_v52  ;;  %v3960_v52 = vrot.slane %v3951_v16, %v5994_v48 }
 0x659   : > { %v3965_v18 = vsub.f32 %v6245_v33, %v3956_v26 }
 0x65b   : > { %3899 = vmatpush1.bf16.msra.mxu1 %v5005_v22  ;;  %v3967_v22 = vld [vmem:[%s6421_s5] sm:$0x3] }
 0x711   : > { %v4670_v28 = vpop.f32.mrb[28].mxu1 }
 0x712   : > { %v4671_v47 = vpop.f32.mrb[29].mxu1 }
 0x713   : > { %v4672_v14 = vadd.f32 %v4671_v47, %v4670_v28  ;;  %v4673_v53 = vpop.f32.mrb[30].mxu1  ;;  %v3963_v47 = vsub.f32 %v6243_v56, %v3956_v26 }
 0x714   : > { %v4674_v61 = vpop.f32.mrb[31].mxu1 }
 0x715   : > { %v3618_v54 = vadd.f32 %v4672_v14, %v4491_v59  ;;  %v4675_v55 = vadd.f32 %v4674_v61, %v4673_v53  ;;  %v3988_v53 = vrot.slane %v3983_v8, %v5983_v45  ;;  %v3972_v61 = vrot.slane %v3967_v22, %v5983_v45 }
 0x717   : > { %v3621_v62 = vadd.f32 %v4675_v55, %v4491_v59  ;;  %v3624_v10 = vmax.f32 %v3618_v54, 0.0  ;;  %v3964_v55 = vsub.f32 %v6247_v23, %v3960_v52 }
 0x719   : > { %v3625_v12 = vmax.f32 %v3621_v62, 0.0 }
 0x71b   : > { %v3626_v13 = vpack.c.bf16 %v3625_v12, %v3624_v10  ;;  %v3992_v10 = vrot.slane %v3983_v8, %v5994_v48  ;;  %v3976_v12 = vrot.slane %v3967_v22, %v5994_v48 }
 0x71d   : > { %3874 = vmatmul.mubr.bf16.vlgmr.msra.gmra.mrb[32].mxu0 %v3626_v13  ;;  %3917 = vmatmul.mubr.bf16.vlgmr.msra.gmra.mrb[32].mxu1 %v3626_v13  ;;  %v3980_v33 = vmul.f32 %v3976_v12, %v3964_v55 }
 0x7f0   : > { %v3875_v5 = vpop.f32.mrb[32].mxu0  ;;  %v3918_v37 = vpop.f32.mrb[32].mxu1 }
 0x7f1   : > { %v3876_v19 = vadd.f32 %v3875_v5, %v3664_v0  ;;  %v3877_v30 = vpop.f32.mrb[33].mxu0  ;;  %v3920_v21 = vpop.f32.mrb[33].mxu1  ;;  %v3919_v36 = vadd.f32 %v3918_v37, %v3672_v29 }
 0x7f2   : > { %v3878_v40 = vadd.f32 %v3877_v30, %v3668_v20  ;;  %v3879_v25 = vpop.f32.mrb[34].mxu0  ;;  %v3922_v3 = vpop.f32.mrb[34].mxu1  ;;  %v3921_v46 = vadd.f32 %v3920_v21, %v3676_v35  ;;  %v3979_v21 = vmul.f32 %v3972_v61, %v3963_v47 }
 0x7f3   : > { %5088 = vtanh.f32 %v3876_v19  ;;  %v3880_v2 = vadd.f32 %v3879_v25, %v3664_v0  ;;  %v3881_v38 = vpop.f32.mrb[35].mxu0  ;;  %v3924_v39 = vpop.f32.mrb[35].mxu1  ;;  %v3923_v28 = vadd.f32 %v3922_v3, %v3672_v29  ;;  %v3931_v14 = vsub.f32 %v6069_v63, %v3919_v36 }
 0x7f4   : > { %5090 = vtanh.f32 %v3878_v40  ;;  %v3882_v60 = vadd.f32 %v3881_v38, %v3668_v20  ;;  %v3925_v59 = vadd.f32 %v3924_v39, %v3676_v35  ;;  %v3932_v62 = vsub.f32 %v6061_v58, %v3921_v46 }
 0x7f5   : > { %5092 = vtanh.f32 %v3880_v2  ;;  %v3933_v56 = vsub.f32 %v6057_v42, %v3923_v28  ;;  %v4004_v63 = vrot.slane %v3999_v49, %v5983_v45  ;;  %v3966_v20 = vsub.f32 %v6249_v57, %v3960_v52 }
 0x7f6   : > { %5094 = vtanh.f32 %v3882_v60  ;;  %v3934_v23 = vsub.f32 %v6065_v50, %v3925_v59  ;;  %v4008_v58 = vrot.slane %v3999_v49, %v5994_v48  ;;  %v3981_v42 = vmul.f32 %v3972_v61, %v3965_v18 }
 0x7f7   : > { %v3982_v39 = vmul.f32 %v3976_v12, %v3966_v20  ;;  %v4019_v60 = vmul.f32 %v3979_v21, %v3979_v21 }
 0x7fd   : > { %v6264_v24 = vpop.eup %5088 }
 0x7fe   : > { %v6266_v4 = vpop.eup %5090  ;;  %v3935_v43 = vsub.f32 0.0, %v6264_v24 }
 0x7ff   : > { %v6269_v1 = vpop.eup %5092  ;;  %v3936_v44 = vsub.f32 0.0, %v6266_v4  ;;  %v4016_v26 = vadd.f32 %v6266_v4, %v6227_v7  ;;  %v4043_v7 = vpop.xlane.xlu0 %4042 }
 0x800   : > { %v6272_v31 = vpop.eup %5094  ;;  %v3939_v32 = vmul.f32 1.442695, %v3935_v43  ;;  %v3937_v11 = vsub.f32 0.0, %v6269_v1  ;;  %v4017_v46 = vadd.f32 %v6269_v1, %v6230_v15  ;;  %v4048_v4 = vpop.xlane.xlu1 %4047  ;;  %v4059_v1 = vstv %s4677_s25 }
 0x801   : > { %v3941_v34 = vmul.f32 1.442695, %v3936_v44  ;;  %v3938_v6 = vsub.f32 0.0, %v6272_v31  ;;  %v4020_v44 = vmul.f32 %v3980_v33, %v3980_v33  ;;  %v4018_v59 = vadd.f32 %v6272_v31, %v6233_v9 }
 0x802   : > { %5096 = vpow2.f32 %v3939_v32  ;;  %v3943_v27 = vmul.f32 1.442695, %v3937_v11  ;;  %v4021_v11 = vmul.f32 %v3981_v42, %v3981_v42 }
 0x803   : > { %5098 = vpow2.f32 %v3941_v34  ;;  %v3945_v51 = vmul.f32 1.442695, %v3938_v6 }
 0x804   : > { %5100 = vpow2.f32 %v3943_v27  ;;  %v4022_v27 = vmul.f32 %v3982_v39, %v3982_v39 }
 0x805   : > { %5102 = vpow2.f32 %v3945_v51  ;;  %v4015_v51 = vadd.f32 %v6264_v24, %v6225_v41 }
 0x80c   : > { %v5097_v54 = vpop.eup %5096 }
 0x80d   : > { %v5099_v13 = vpop.eup %5098  ;;  %v3947_v17 = vmul.f32 %v5097_v54, %v3931_v14 }
 0x80e   : > { %v5101_v0 = vpop.eup %5100  ;;  %v3948_v5 = vmul.f32 %v5099_v13, %v3932_v62 }
 0x80f   : > { %v5103_v37 = vpop.eup %5102  ;;  %v3995_v19 = vsub.f32 %v3947_v17, %v3988_v53  ;;  %v3949_v30 = vmul.f32 %v5101_v0, %v3933_v56 }
 0x810   : > { %v3996_v40 = vsub.f32 %v3948_v5, %v3992_v10  ;;  %v3950_v25 = vmul.f32 %v5103_v37, %v3934_v23 }
 0x811   : > { %v3997_v3 = vsub.f32 %v3949_v30, %v3988_v53  ;;  %v4011_v2 = vmul.f32 %v4004_v63, %v3995_v19 }
 0x812   : > { %v3998_v38 = vsub.f32 %v3950_v25, %v3992_v10  ;;  %v4012_v45 = vmul.f32 %v4008_v58, %v3996_v40 }
 0x813   : > { %v4023_v57 = vmul.f32 %v4011_v2, %v4011_v2  ;;  %v4013_v43 = vmul.f32 %v4004_v63, %v3997_v3 }
 0x814   : > { %v4024_v50 = vmul.f32 %v4012_v45, %v4012_v45  ;;  %v4014_v32 = vmul.f32 %v4008_v58, %v3998_v38 }
 0x815   : > { %v4027_v48 = vadd.f32 %v4023_v57, %v4019_v60  ;;  %v4025_v34 = vmul.f32 %v4013_v43, %v4013_v43 }
 0x816   : > { %v4028_v6 = vadd.f32 %v4024_v50, %v4020_v44  ;;  %v4026_v29 = vmul.f32 %v4014_v32, %v4014_v32 }
 0x817   : > { %v4031_v16 = vmul.f32 0.5, %v4027_v48  ;;  %v4029_v35 = vadd.f32 %v4025_v34, %v4021_v11 }
 0x818   : > { %v4032_v36 = vmul.f32 0.5, %v4028_v6  ;;  %v4030_v52 = vadd.f32 %v4026_v29, %v4022_v27 }
 0x819   : > { %v4035_v8 = vadd.f32 %v4031_v16, %v4015_v51  ;;  %v4033_v22 = vmul.f32 0.5, %v4029_v35 }
 0x81a   : > { %v4036_v28 = vadd.f32 %v4032_v36, %v4016_v26  ;;  %v4034_v49 = vmul.f32 0.5, %v4030_v52 }
 0x81b   : > { %v4037_v47 = vadd.f32 %v4033_v22, %v4017_v46 }
 0x81c   : > { %v4049_v41 = vadd.f32 %v4036_v28, %v4035_v8  ;;  %v4038_v24 = vadd.f32 %v4034_v49, %v4018_v59 }
 0x81e   : > { %4050 = vadd.xlane.f32.xlu0 %v4049_v41  ;;  %v4052_v14 = vadd.f32 %v4038_v24, %v4037_v47 }
 0x820   : > { %4053 = vadd.xlane.f32.xlu1 %v4052_v14 }
 0x8ab   : > { %v4051_v15 = vpop.xlane.xlu0 %4050 }
 0x8ac   : > { %v4055_v53 = vadd.f32 %v4051_v15, %v4043_v7 }
 0x8ad   : > { %v4054_v9 = vpop.xlane.xlu1 %4053 }
 0x8ae   : > { %v4060_v31 = vsub.f32 %v4055_v53, %v4059_v1  ;;  %v4056_v61 = vadd.f32 %v4054_v9, %v4048_v4 }
 0x8b0   : > { %4063 = vst.msk [vmem:[%s836_s1] sm:$0xff] %vm4062_vm0, %v4060_v31  ;;  %v4061_v54 = vsub.f32 %v4056_v61, %v4059_v1 }
 0x8b2   : > { %4064 = vst.msk [vmem:[%s836_s1 + $0x8] sm:$0xff] %vm4062_vm0, %v4061_v54 }
 0x8b3 PF: > { %p39_p5 = scmp.ge.s32.totalorder %s5852_s26, 4   ;;  %s6424_s29 = smov %s5440_s30 }
 0x8b4   : > { %s6425_s30 = smov %s5444_s4  ;;  %s6426_s4 = smov %s5863_s19 }
 0x8b5   : > { %s6427_s0 = smov %s5852_s26  ;;  %41 = sbr.rel (!%p39_p5) target bundleno = 26 (0x1a), region = 184 }
 0x8bc   :  { %4087 = vsyncpa [#allocation4], 1 }
 0x8bd   :  { %4089 = vsyncpa [#allocation4 + $0x1], 1 }
 0x8be   :  { %4090 = vsyncpa [#allocation6], 1 }
 0x8bf   :  { %4091 = vsyncpa [#allocation9], 1 }
 0x8c0   :  { %4092 = vsyncpa [#allocation12], 1 }
 0x8c1   :  { %4093 = vsyncpa [#allocation15], 1 }
 0x8c2   :  { %4094 = vsyncpa [#allocation18], 1 }

</bundles_post_ra>
